<compile_context>
chip_gen: v6e
topology: v6e:2x2x1
jax: 0.10.0
libtpu: 0.0.40
codegen_flags: <defaults>
</compile_context>

<pallas_src>
import functools
import math

import jax
import jax.numpy as jnp
from jax.experimental import pallas as pl
from jax.experimental.pallas import tpu as pltpu

LOG2PI = 1.8378770664093453  # log(2*pi)
LANES = 128                  # TPU lane width


def _round_up(x, m):
    return ((x + m - 1) // m) * m


def nfvae_kernel(x_ref, wenc_ref, benc_ref, eps_ref, u_ref, w_ref, buw_ref,
                 out_ref, acc_ref, *, latent_dim, num_flows, num_samples,
                 tile_dx, pin_w_enc):
    # Grid: (batch tiles i, Dx contraction tiles k).
    #   x_ref    (TILE_B, TILE_DX)       un-replicated input slab for this (i, k) step
    #   wenc_ref (Dx_pad, 256) pinned    mean cols [0,L), log_std cols [128,128+L)
    #            or (TILE_DX, 256)       streamed fallback when too big to pin
    #   benc_ref (1, 256)                encoder bias, same lane layout
    #   eps_ref  (S, TILE_B, 128)        pre-drawn N(0,1) noise (matmul dtype), pad lanes 0
    #   u_ref    (K, 128), w_ref (K,128) planar u_hat / w, zero-padded lanes >= L
    #   buw_ref  (2, K) in SMEM          row 0 = planar bias b, row 1 = u_hat . w
    #   out_ref  (S, TILE_B, 128)        packed: z lanes [0,L), log_q lane L, log_p lane L+1
    #   acc_ref  (TILE_B, 256) f32       encoder matmul accumulator (VMEM scratch)
    k = pl.program_id(1)

    @pl.when(k == 0)
    def _init():
        acc_ref[...] = jnp.zeros_like(acc_ref)

    # Encoder partial matmul on the MXU, f32 accumulation (operands may be bf16).
    if pin_w_enc:
        start = pl.multiple_of(k * tile_dx, 128)
        w_blk = wenc_ref[pl.ds(start, tile_dx), :]    # resident slab, sliced per k
    else:
        w_blk = wenc_ref[...]                          # streamed per contraction tile
    acc_ref[...] += jnp.dot(x_ref[...], w_blk, preferred_element_type=jnp.float32)

    @pl.when(k == pl.num_programs(1) - 1)
    def _finalize():
        L = latent_dim
        p = acc_ref[...] + benc_ref[...]               # (TILE_B, 256)
        # Static slices at the 128-lane vreg boundary: no cross-lane (XLU) work, no roll.
        mean_half = p[:, :LANES]
        logstd_half = p[:, LANES:]

        # Loop-invariant lane masks, hoisted out of the per-sample loop.
        lane = jax.lax.broadcasted_iota(jnp.int32, mean_half.shape, 1)
        in_latent = lane < L
        is_logq_lane = lane == L
        is_logp_lane = lane == L + 1

        mean = jnp.where(in_latent, mean_half, 0.0)
        log_std = jnp.where(in_latent, logstd_half, 0.0)
        std = jnp.exp(log_std)                          # exp(0)=1 in pad lanes; eps pad = 0
        base_log_q = (-0.5 * L * LOG2PI
                      - jnp.sum(log_std, axis=-1, keepdims=True))   # (TILE_B, 1)

        # Hoist the tiny per-flow parameter reads out of the unrolled loops.
        U = u_ref[...]
        W = w_ref[...]
        u_rows = [U[kf:kf + 1, :] for kf in range(num_flows)]       # (1, 128) each
        w_rows = [W[kf:kf + 1, :] for kf in range(num_flows)]
        b_vals = [buw_ref[0, kf] for kf in range(num_flows)]        # SMEM scalars
        uw_vals = [buw_ref[1, kf] for kf in range(num_flows)]

        # Encoder ran once per batch tile; samples reuse mean/std in-register.
        # TODO(synk): for large num_samples switch this to lax.fori_loop(..., unroll=4)
        #             to bound live ranges / vreg pressure; S is tiny here.
        for s in range(num_samples):
            eps = eps_ref[s].astype(jnp.float32)        # (TILE_B, 128)
            z = mean + std * eps
            log_q = base_log_q - 0.5 * jnp.sum(eps * eps, axis=-1, keepdims=True)
            # TODO(synk): for large num_flows, restructure into two MXU matmuls
            #             (z0 @ W.T and H @ U_hat) + a scalar recurrence; K<=4 here so
            #             the VPU/XLU path is the shorter tail.
            for kf in range(num_flows):
                lin = jnp.sum(z * w_rows[kf], axis=-1, keepdims=True) + b_vals[kf]
                h = jnp.tanh(lin)                       # (TILE_B, 1)
                z = z + u_rows[kf] * h                  # planar update
                log_q = log_q - jnp.log(jnp.abs(1.0 + (1.0 - h * h) * uw_vals[kf]))
            log_p = -0.5 * L * LOG2PI - 0.5 * jnp.sum(z * z, axis=-1, keepdims=True)
            # Pack z / log_q / log_p into one lane-dense 128-wide store.
            packed = jnp.where(in_latent, z, 0.0)
            packed = jnp.where(is_logq_lane, log_q, packed)
            packed = jnp.where(is_logp_lane, log_p, packed)
            out_ref[s] = packed


def planar_u_hat(u, w):
    """normflows Planar invertibility constraint."""
    wu = jnp.sum(w * u)
    m_wu = -1.0 + jax.nn.softplus(wu)     # -1 + softplus(w . u)
    return u + (m_wu - wu) * w / jnp.sum(w * w)


def normalizing_flow_vae_forward(x, params, eps, num_samples, *,
                                 tile_b=None, tile_dx=None,
                                 matmul_dtype=jnp.bfloat16, pin_w_enc=None):
    """x: (B, C, H, W); eps: (B, num_samples, L). Returns (z, log_q, log_p)."""
    B = x.shape[0]
    Dx = math.prod(x.shape[1:])
    L = params["w_enc"].shape[1] // 2
    K = params["flow_u"].shape[0]
    S = num_samples
    assert L + 2 <= LANES, "latent_dim must be <= 126 for the 128-lane packed output"

    f32 = jnp.float32
    itemsize = jnp.dtype(matmul_dtype).itemsize

    # ---- tile sizes -------------------------------------------------------------------
    b_align = 16                                   # bf16 sublane packing on x / eps blocks
    B_req = _round_up(B, b_align)
    if tile_b is None:
        tile_b = 512                               # big tiles: ~0.35us/step overhead amortized
    # v7x has 2 TensorCores: keep >= 2 batch tiles whenever the batch allows it so the
    # "parallel" batch axis can shard across both cores.
    if B_req >= 2 * b_align:
        tile_b = min(tile_b, _round_up((B_req + 1) // 2, b_align))
    tile_b = max(b_align, _round_up(min(tile_b, B_req), b_align))
    B_pad = _round_up(B, tile_b)
    nb = B_pad // tile_b

    if tile_dx is None:
        tile_dx = 1024
    tile_dx = _round_up(min(tile_dx, _round_up(Dx, LANES)), LANES)
    Dx_pad = _round_up(Dx, tile_dx)
    nk = Dx_pad // tile_dx

    # Pin the encoder weights resident in VMEM (loaded once total) unless the slab would
    # blow the budget of the smallest-VMEM generation (v7x: 64 MiB physical); 2x accounts
    # for double buffering.  Otherwise fall back to streaming one contraction tile per k.
    wenc_bytes = Dx_pad * 2 * LANES * itemsize
    if pin_w_enc is None:
        pin_w_enc = 2 * wenc_bytes <= 24 * 1024 * 1024

    # ---- un-replicated, zero-padded inputs (no jnp.repeat of x anywhere) ----------------
    x_flat = x.reshape(B, Dx).astype(f32)
    x_pad = jnp.pad(x_flat, ((0, B_pad - B), (0, Dx_pad - Dx))).astype(matmul_dtype)

    # Encoder weights on 256 lanes: mean cols [0, L), log_std cols [128, 128+L).
    w_enc = params["w_enc"].astype(f32)                                   # (Dx, 2L)
    wenc_pad = jnp.zeros((Dx_pad, 2 * LANES), f32)
    wenc_pad = wenc_pad.at[:Dx, :L].set(w_enc[:, :L])
    wenc_pad = wenc_pad.at[:Dx, LANES:LANES + L].set(w_enc[:, L:])
    wenc_pad = wenc_pad.astype(matmul_dtype)

    b_enc = params["b_enc"].astype(f32)
    benc_pad = jnp.zeros((1, 2 * LANES), f32)
    benc_pad = benc_pad.at[0, :L].set(b_enc[:L])
    benc_pad = benc_pad.at[0, LANES:LANES + L].set(b_enc[L:])

    # eps in the matmul dtype (bf16 by default) halves its HBM stream; pad lanes are 0.
    # TODO(synk): could be removed entirely with in-kernel pltpu.prng_* sampling, but eps
    #             is kept as an input so the reference can use identical noise.
    eps_t = jnp.transpose(eps.astype(f32), (1, 0, 2))                     # (S, B, L)
    eps_pad = jnp.pad(eps_t, ((0, 0), (0, B_pad - B), (0, LANES - L)))
    eps_pad = eps_pad.astype(matmul_dtype)

    # Planar invertibility constraint (tiny per-flow vector math -> wrapper glue).
    flow_w = params["flow_w"].astype(f32)
    u_hat = jax.vmap(planar_u_hat)(params["flow_u"].astype(f32), flow_w)  # (K, L)
    u_pad = jnp.pad(u_hat, ((0, 0), (0, LANES - L)))
    w_pad = jnp.pad(flow_w, ((0, 0), (0, LANES - L)))
    uw = jnp.sum(u_hat * flow_w, axis=-1)                                 # (K,)
    buw = jnp.stack([params["flow_b"].astype(f32), uw], axis=0)           # (2, K)

    kernel = functools.partial(nfvae_kernel, latent_dim=L, num_flows=K,
                               num_samples=S, tile_dx=tile_dx, pin_w_enc=pin_w_enc)

    if pin_w_enc:
        wenc_spec = pl.BlockSpec((Dx_pad, 2 * LANES), lambda i, k: (0, 0))   # resident
        wenc_reads = 1
    else:
        wenc_spec = pl.BlockSpec((tile_dx, 2 * LANES), lambda i, k: (k, 0))  # streamed
        wenc_reads = nb

    cost = pl.CostEstimate(
        flops=2 * B_pad * Dx_pad * 2 * LANES + 10 * S * B_pad * LANES * K,
        transcendentals=B_pad * LANES + 3 * S * B_pad * K,
        bytes_accessed=(B_pad * Dx_pad * itemsize            # x, streamed once
                        + wenc_reads * wenc_bytes            # w_enc (pinned: once)
                        + S * B_pad * LANES * itemsize       # eps
                        + S * B_pad * LANES * 4),            # packed output
    )

    # TODO(synk): optionally add pipeline_mode=pl.Buffered(3) on the x BlockSpec to hide
    #             the k==last epilogue tail; left at the default depth for portability.
    out = pl.pallas_call(
        kernel,
        out_shape=jax.ShapeDtypeStruct((S, B_pad, LANES), f32),
        grid_spec=pltpu.PrefetchScalarGridSpec(
            num_scalar_prefetch=0,
            grid=(nb, nk),
            in_specs=[
                pl.BlockSpec((tile_b, tile_dx), lambda i, k: (i, k)),       # x
                wenc_spec,                                                  # w_enc
                pl.BlockSpec((1, 2 * LANES), lambda i, k: (0, 0)),          # b_enc
                pl.BlockSpec((S, tile_b, LANES), lambda i, k: (0, i, 0)),   # eps
                pl.BlockSpec((K, LANES), lambda i, k: (0, 0)),              # u_hat
                pl.BlockSpec((K, LANES), lambda i, k: (0, 0)),              # flow w
                pl.BlockSpec(memory_space=pltpu.MemorySpace.SMEM),          # (b, u.w) scalars
            ],
            out_specs=pl.BlockSpec((S, tile_b, LANES), lambda i, k: (0, i, 0)),
            scratch_shapes=[pltpu.VMEM((tile_b, 2 * LANES), jnp.float32)],
        ),
        compiler_params=pltpu.CompilerParams(
            dimension_semantics=("parallel", "arbitrary"),
            # <= ~48 MiB keeps headroom even on v7x's 64 MiB physical VMEM, and is well
            # above v5e's 16 MiB scoped default.
            vmem_limit_bytes=48 * 1024 * 1024,
        ),
        cost_estimate=cost,
    )(x_pad, wenc_pad, benc_pad, eps_pad, u_pad, w_pad, buw)

    # ---- unpack the lane-dense output slab (wrapper glue) ----
    z = jnp.transpose(out[:, :B, :L], (1, 0, 2))              # (B, S, L)
    log_q = jnp.transpose(out[:, :B, L], (1, 0))              # (B, S)
    log_p = jnp.transpose(out[:, :B, L + 1], (1, 0))          # (B, S)
    return z, log_q, log_p


def reference_forward(x, params, eps, num_samples, *, matmul_dtype=jnp.float32):
    """Pure-JAX reference. `matmul_dtype` quantizes x / w_enc / eps exactly like the
    kernel's operand cast so the bf16 path can be checked with a tight tolerance."""
    B = x.shape[0]
    Dx = math.prod(x.shape[1:])
    L = params["w_enc"].shape[1] // 2
    K = params["flow_u"].shape[0]
    N = B * num_samples
    f32 = jnp.float32

    x_flat = x.reshape(B, Dx).astype(matmul_dtype).astype(f32)
    w_enc = params["w_enc"].astype(matmul_dtype).astype(f32)
    eps_q = eps.astype(matmul_dtype).astype(f32)

    p = jnp.dot(x_flat, w_enc, precision=jax.lax.Precision.HIGHEST) + params["b_enc"]
    mean, log_std = p[:, :L], p[:, L:]
    eps_flat = eps_q.reshape(N, L)
    mean_r = jnp.repeat(mean, num_samples, axis=0)
    log_std_r = jnp.repeat(log_std, num_samples, axis=0)
    z = mean_r + jnp.exp(log_std_r) * eps_flat
    log_q = (-0.5 * L * LOG2PI
             - jnp.sum(log_std_r, axis=-1)
             - 0.5 * jnp.sum(eps_flat ** 2, axis=-1))
    u_hat = jax.vmap(planar_u_hat)(params["flow_u"].astype(f32),
                                   params["flow_w"].astype(f32))
    for k in range(K):
        u_k, w_k, b_k = u_hat[k], params["flow_w"][k], params["flow_b"][k]
        lin = z @ w_k + b_k
        h = jnp.tanh(lin)
        z = z + u_k[None, :] * h[:, None]
        log_det = jnp.log(jnp.abs(1.0 + (1.0 - h ** 2) * jnp.sum(u_k * w_k)))
        log_q = log_q - log_det
    log_p = -0.5 * L * LOG2PI - 0.5 * jnp.sum(z ** 2, axis=-1)
    return (z.reshape(B, num_samples, L),
            log_q.reshape(B, num_samples),
            log_p.reshape(B, num_samples))


if __name__ == "__main__":
    B, C, H, W = 2, 4, 16, 16
    num_samples = 2
    latent_dim = 32
    num_flows = 4
    Dx = C * H * W

    key = jax.random.PRNGKey(0)
    kx, keps, kw, kb, ku, kwf, kbf = jax.random.split(key, 7)

    x = jax.random.normal(kx, (B, C, H, W), jnp.float32)
    eps = jax.random.normal(keps, (B, num_samples, latent_dim), jnp.float32)

    params = {
        "w_enc": 0.02 * jax.random.normal(kw, (Dx, 2 * latent_dim), jnp.float32),
        "b_enc": 0.01 * jax.random.normal(kb, (2 * latent_dim,), jnp.float32),
        "flow_u": 0.1 * jax.random.normal(ku, (num_flows, latent_dim), jnp.float32),
        "flow_w": 0.1 * jax.random.normal(kwf, (num_flows, latent_dim), jnp.float32),
        "flow_b": 0.1 * jax.random.normal(kbf, (num_flows,), jnp.float32),
    }
    # TODO(synk): optional `decoder.log_prob(x, z)` term omitted (decoder=None is valid).

    # f32 path, small Dx tile so the multi-step contraction/accumulator path (and the
    # pinned-weight pl.ds slicing) is exercised.
    z, log_q, log_p = normalizing_flow_vae_forward(
        x, params, eps, num_samples, tile_dx=256, matmul_dtype=jnp.float32)
    jax.block_until_ready((z, log_q, log_p))

    z_ref, log_q_ref, log_p_ref = reference_forward(x, params, eps, num_samples)
    assert z.shape == (B, num_samples, latent_dim)
    assert log_q.shape == (B, num_samples) and log_p.shape == (B, num_samples)
    assert jnp.allclose(z, z_ref, atol=2e-3, rtol=2e-3)
    assert jnp.allclose(log_q, log_q_ref, atol=2e-3, rtol=2e-3)
    assert jnp.allclose(log_p, log_p_ref, atol=2e-3, rtol=2e-3)

    # f32 path with the streamed (non-pinned) w_enc fallback exercised explicitly.
    z_s, lq_s, lp_s = normalizing_flow_vae_forward(
        x, params, eps, num_samples, tile_dx=256, matmul_dtype=jnp.float32,
        pin_w_enc=False)
    jax.block_until_ready((z_s, lq_s, lp_s))
    assert jnp.allclose(z_s, z_ref, atol=2e-3, rtol=2e-3)
    assert jnp.allclose(lq_s, log_q_ref, atol=2e-3, rtol=2e-3)
    assert jnp.allclose(lp_s, log_p_ref, atol=2e-3, rtol=2e-3)

    # Default bf16 MXU-operand path (v5e/v6e/v7x recommendation); checked against a
    # reference that sees identically-quantized operands, so tolerance stays tight.
    z16, lq16, lp16 = normalizing_flow_vae_forward(x, params, eps, num_samples)
    jax.block_until_ready((z16, lq16, lp16))
    z16_ref, lq16_ref, lp16_ref = reference_forward(
        x, params, eps, num_samples, matmul_dtype=jnp.bfloat16)
    assert jnp.allclose(z16, z16_ref, atol=5e-3, rtol=5e-3)
    assert jnp.allclose(lq16, lq16_ref, atol=5e-3, rtol=5e-3)
    assert jnp.allclose(lp16, lp16_ref, atol=5e-3, rtol=5e-3)

    print("KERNEL_OK")
</pallas_src>

<mosaic_0001>
module attributes {stable_mosaic.version = 11 : i64} {
  func.func @nfvae_kernel(%arg0: i32, %arg1: i32, %arg2: memref<16x256xf32, #tpu.memory_space<vmem>>, %arg3: memref<1024x256xf32, #tpu.memory_space<vmem>>, %arg4: memref<1x256xf32, #tpu.memory_space<vmem>>, %arg5: memref<2x16x128xf32, #tpu.memory_space<vmem>>, %arg6: memref<4x128xf32, #tpu.memory_space<vmem>>, %arg7: memref<4x128xf32, #tpu.memory_space<vmem>>, %arg8: memref<2x4xf32, #tpu.memory_space<smem>>, %arg9: memref<2x16x128xf32, #tpu.memory_space<vmem>>, %arg10: memref<16x256xf32, #tpu.memory_space<vmem>>) attributes {dimension_semantics = [#tpu.dimension_semantics<parallel>, #tpu.dimension_semantics<arbitrary>], iteration_bounds = array<i64: 1, 4>, scalar_prefetch = 0 : i64, scratch_operands = 1 : i64, tpu.core_type = #tpu.core_type<tc>, window_params = [{transform_indices = @transform_0, window_bounds = array<i64: 16, 256>}, {pipeline_mode = #tpu.pipeline_mode<synchronous>, transform_indices = @transform_1, window_bounds = array<i64: 1024, 256>}, {pipeline_mode = #tpu.pipeline_mode<synchronous>, transform_indices = @transform_2, window_bounds = array<i64: 1, 256>}, {transform_indices = @transform_3, window_bounds = array<i64: 2, 16, 128>}, {pipeline_mode = #tpu.pipeline_mode<synchronous>, transform_indices = @transform_4, window_bounds = array<i64: 4, 128>}, {pipeline_mode = #tpu.pipeline_mode<synchronous>, transform_indices = @transform_5, window_bounds = array<i64: 4, 128>}, {transform_indices = @transform_6, window_bounds = array<i64: 2, 4>}, {transform_indices = @transform_7, window_bounds = array<i64: 2, 16, 128>}]} {
    %c0_i32 = arith.constant 0 : i32
    %0 = arith.cmpi eq, %arg1, %c0_i32 : i32
    %1 = arith.extui %0 : i1 to i32
    %c0_i32_0 = arith.constant 0 : i32
    %2 = arith.cmpi ne, %1, %c0_i32_0 : i32
    scf.if %2 {
      %cst_8 = arith.constant 0.000000e+00 : f32
      %15 = vector.broadcast %cst_8 : f32 to vector<16x256xf32>
      %c0_9 = arith.constant 0 : index
      %c0_10 = arith.constant 0 : index
      %16 = vector.load %arg10[%c0_9, %c0_10] : memref<16x256xf32, #tpu.memory_space<vmem>>, vector<16x256xf32>
      tpu.vector_store %arg10[%c0_9, %c0_10], %15 {strides = array<i32>} : memref<16x256xf32, #tpu.memory_space<vmem>>, vector<16x256xf32>,
    } else {
    }
    %c256_i32 = arith.constant 256 : i32
    %3 = arith.muli %arg1, %c256_i32 : i32
    %4 = tpu.assume_multiple %3, 128 : i32
    %5 = arith.index_cast %4 : i32 to index
    %c0 = arith.constant 0 : index
    %6 = vector.load %arg3[%5, %c0] : memref<1024x256xf32, #tpu.memory_space<vmem>>, vector<256x256xf32>
    %c0_1 = arith.constant 0 : index
    %c0_2 = arith.constant 0 : index
    %7 = vector.load %arg10[%c0_1, %c0_2] : memref<16x256xf32, #tpu.memory_space<vmem>>, vector<16x256xf32>
    %c0_3 = arith.constant 0 : index
    %c0_4 = arith.constant 0 : index
    %8 = vector.load %arg2[%c0_3, %c0_4] : memref<16x256xf32, #tpu.memory_space<vmem>>, vector<16x256xf32>
    %cst = arith.constant dense<0.000000e+00> : vector<16x256xf32>
    %9 = tpu.matmul %8, %6, %cst {dimension_numbers = #tpu.dot_dimension_numbers<[1], [0], [0], [1], [0, 0, 1, 1], [], []>} : vector<16x256xf32>, vector<256x256xf32>, vector<16x256xf32> -> vector<16x256xf32>
    %10 = arith.addf %7, %9 : vector<16x256xf32>
    %c0_5 = arith.constant 0 : index
    %c0_6 = arith.constant 0 : index
    %11 = vector.load %arg10[%c0_5, %c0_6] : memref<16x256xf32, #tpu.memory_space<vmem>>, vector<16x256xf32>
    tpu.vector_store %arg10[%c0_5, %c0_6], %10 {strides = array<i32>} : memref<16x256xf32, #tpu.memory_space<vmem>>, vector<16x256xf32>,
    %c3_i32 = arith.constant 3 : i32
    %12 = arith.cmpi eq, %arg1, %c3_i32 : i32
    %13 = arith.extui %12 : i1 to i32
    %c0_i32_7 = arith.constant 0 : i32
    %14 = arith.cmpi ne, %13, %c0_i32_7 : i32
    scf.if %14 {
      %c0_8 = arith.constant 0 : index
      %c0_9 = arith.constant 0 : index
      %15 = vector.load %arg10[%c0_8, %c0_9] : memref<16x256xf32, #tpu.memory_space<vmem>>, vector<16x256xf32>
      %c0_10 = arith.constant 0 : index
      %c0_11 = arith.constant 0 : index
      %16 = vector.load %arg4[%c0_10, %c0_11] : memref<1x256xf32, #tpu.memory_space<vmem>>, vector<1x256xf32>
      %17 = vector.broadcast %16 : vector<1x256xf32> to vector<16x256xf32>
      %18 = arith.addf %15, %17 : vector<16x256xf32>
      %19 = vector.extract_strided_slice %18 {offsets = [0, 0], sizes = [16, 128], strides = [1, 1]} : vector<16x256xf32> to vector<16x128xf32>
      %20 = vector.extract_strided_slice %18 {offsets = [0, 128], sizes = [16, 128], strides = [1, 1]} : vector<16x256xf32> to vector<16x128xf32>
      %21 = tpu.iota {dimensions = array<i32: 1>} : vector<16x128xi32>
      %c32_i32 = arith.constant 32 : i32
      %22 = vector.broadcast %c32_i32 : i32 to vector<16x128xi32>
      %23 = arith.cmpi slt, %21, %22 : vector<16x128xi32>
      %c32_i32_12 = arith.constant 32 : i32
      %24 = vector.broadcast %c32_i32_12 : i32 to vector<16x128xi32>
      %25 = arith.cmpi eq, %21, %24 : vector<16x128xi32>
      %c33_i32 = arith.constant 33 : i32
      %26 = vector.broadcast %c33_i32 : i32 to vector<16x128xi32>
      %27 = arith.cmpi eq, %21, %26 : vector<16x128xi32>
      %cst_13 = arith.constant 0.000000e+00 : f32
      %28 = vector.broadcast %cst_13 : f32 to vector<16x128xf32>
      %29 = arith.select %23, %19, %28 : vector<16x128xi1>, vector<16x128xf32>
      %cst_14 = arith.constant 0.000000e+00 : f32
      %30 = vector.broadcast %cst_14 : f32 to vector<16x128xf32>
      %31 = arith.select %23, %20, %30 : vector<16x128xi1>, vector<16x128xf32>
      %32 = math.exp %31 : vector<16x128xf32>
      %cst_15 = arith.constant dense<0.000000e+00> : vector<16xf32>
      %33 = vector.multi_reduction <add>, %31, %cst_15 [1] : vector<16x128xf32> to vector<16xf32>
      %34 = vector.shape_cast %33 : vector<16xf32> to vector<16x1xf32>
      %cst_16 = arith.constant -29.4060326 : f32
      %35 = vector.broadcast %cst_16 : f32 to vector<16x1xf32>
      %36 = arith.subf %35, %34 : vector<16x1xf32>
      %c0_17 = arith.constant 0 : index
      %c0_18 = arith.constant 0 : index
      %37 = vector.load %arg6[%c0_17, %c0_18] : memref<4x128xf32, #tpu.memory_space<vmem>>, vector<4x128xf32>
      %c0_19 = arith.constant 0 : index
      %c0_20 = arith.constant 0 : index
      %38 = vector.load %arg7[%c0_19, %c0_20] : memref<4x128xf32, #tpu.memory_space<vmem>>, vector<4x128xf32>
      %39 = vector.extract_strided_slice %37 {offsets = [0, 0], sizes = [1, 128], strides = [1, 1]} : vector<4x128xf32> to vector<1x128xf32>
      %40 = vector.extract_strided_slice %37 {offsets = [1, 0], sizes = [1, 128], strides = [1, 1]} : vector<4x128xf32> to vector<1x128xf32>
      %41 = vector.extract_strided_slice %37 {offsets = [2, 0], sizes = [1, 128], strides = [1, 1]} : vector<4x128xf32> to vector<1x128xf32>
      %42 = vector.extract_strided_slice %37 {offsets = [3, 0], sizes = [1, 128], strides = [1, 1]} : vector<4x128xf32> to vector<1x128xf32>
      %43 = vector.extract_strided_slice %38 {offsets = [0, 0], sizes = [1, 128], strides = [1, 1]} : vector<4x128xf32> to vector<1x128xf32>
      %44 = vector.extract_strided_slice %38 {offsets = [1, 0], sizes = [1, 128], strides = [1, 1]} : vector<4x128xf32> to vector<1x128xf32>
      %45 = vector.extract_strided_slice %38 {offsets = [2, 0], sizes = [1, 128], strides = [1, 1]} : vector<4x128xf32> to vector<1x128xf32>
      %46 = vector.extract_strided_slice %38 {offsets = [3, 0], sizes = [1, 128], strides = [1, 1]} : vector<4x128xf32> to vector<1x128xf32>
      %c0_21 = arith.constant 0 : index
      %c0_22 = arith.constant 0 : index
      %47 = memref.load %arg8[%c0_21, %c0_22] : memref<2x4xf32, #tpu.memory_space<smem>>
      %c0_23 = arith.constant 0 : index
      %c1 = arith.constant 1 : index
      %48 = memref.load %arg8[%c0_23, %c1] : memref<2x4xf32, #tpu.memory_space<smem>>
      %c0_24 = arith.constant 0 : index
      %c2 = arith.constant 2 : index
      %49 = memref.load %arg8[%c0_24, %c2] : memref<2x4xf32, #tpu.memory_space<smem>>
      %c0_25 = arith.constant 0 : index
      %c3 = arith.constant 3 : index
      %50 = memref.load %arg8[%c0_25, %c3] : memref<2x4xf32, #tpu.memory_space<smem>>
      %c1_26 = arith.constant 1 : index
      %c0_27 = arith.constant 0 : index
      %51 = memref.load %arg8[%c1_26, %c0_27] : memref<2x4xf32, #tpu.memory_space<smem>>
      %c1_28 = arith.constant 1 : index
      %c1_29 = arith.constant 1 : index
      %52 = memref.load %arg8[%c1_28, %c1_29] : memref<2x4xf32, #tpu.memory_space<smem>>
      %c1_30 = arith.constant 1 : index
      %c2_31 = arith.constant 2 : index
      %53 = memref.load %arg8[%c1_30, %c2_31] : memref<2x4xf32, #tpu.memory_space<smem>>
      %c1_32 = arith.constant 1 : index
      %c3_33 = arith.constant 3 : index
      %54 = memref.load %arg8[%c1_32, %c3_33] : memref<2x4xf32, #tpu.memory_space<smem>>
      %c0_34 = arith.constant 0 : index
      %c0_35 = arith.constant 0 : index
      %c0_36 = arith.constant 0 : index
      %55 = vector.load %arg5[%c0_34, %c0_35, %c0_36] : memref<2x16x128xf32, #tpu.memory_space<vmem>>, vector<1x16x128xf32>
      %56 = vector.shape_cast %55 : vector<1x16x128xf32> to vector<16x128xf32>
      %57 = arith.mulf %32, %56 : vector<16x128xf32>
      %58 = arith.addf %29, %57 : vector<16x128xf32>
      %59 = arith.mulf %56, %56 : vector<16x128xf32>
      %cst_37 = arith.constant dense<0.000000e+00> : vector<16xf32>
      %60 = vector.multi_reduction <add>, %59, %cst_37 [1] : vector<16x128xf32> to vector<16xf32>
      %61 = vector.shape_cast %60 : vector<16xf32> to vector<16x1xf32>
      %cst_38 = arith.constant 5.000000e-01 : f32
      %62 = vector.broadcast %cst_38 : f32 to vector<16x1xf32>
      %63 = arith.mulf %62, %61 : vector<16x1xf32>
      %64 = arith.subf %36, %63 : vector<16x1xf32>
      %65 = vector.broadcast %43 : vector<1x128xf32> to vector<16x128xf32>
      %66 = arith.mulf %58, %65 : vector<16x128xf32>
      %cst_39 = arith.constant dense<0.000000e+00> : vector<16xf32>
      %67 = vector.multi_reduction <add>, %66, %cst_39 [1] : vector<16x128xf32> to vector<16xf32>
      %68 = vector.shape_cast %67 : vector<16xf32> to vector<16x1xf32>
      %69 = vector.broadcast %47 : f32 to vector<16x1xf32>
      %70 = arith.addf %68, %69 : vector<16x1xf32>
      %71 = math.tanh %70 : vector<16x1xf32>
      %72 = vector.broadcast %39 : vector<1x128xf32> to vector<16x128xf32>
      %73 = vector.broadcast %71 : vector<16x1xf32> to vector<16x128xf32>
      %74 = arith.mulf %72, %73 : vector<16x128xf32>
      %75 = arith.addf %58, %74 : vector<16x128xf32>
      %76 = arith.mulf %71, %71 : vector<16x1xf32>
      %cst_40 = arith.constant 1.000000e+00 : f32
      %77 = vector.broadcast %cst_40 : f32 to vector<16x1xf32>
      %78 = arith.subf %77, %76 : vector<16x1xf32>
      %79 = vector.broadcast %51 : f32 to vector<16x1xf32>
      %80 = arith.mulf %78, %79 : vector<16x1xf32>
      %cst_41 = arith.constant 1.000000e+00 : f32
      %81 = vector.broadcast %cst_41 : f32 to vector<16x1xf32>
      %82 = arith.addf %81, %80 : vector<16x1xf32>
      %83 = math.absf %82 : vector<16x1xf32>
      %84 = math.log %83 : vector<16x1xf32>
      %85 = arith.subf %64, %84 : vector<16x1xf32>
      %86 = vector.broadcast %44 : vector<1x128xf32> to vector<16x128xf32>
      %87 = arith.mulf %75, %86 : vector<16x128xf32>
      %cst_42 = arith.constant dense<0.000000e+00> : vector<16xf32>
      %88 = vector.multi_reduction <add>, %87, %cst_42 [1] : vector<16x128xf32> to vector<16xf32>
      %89 = vector.shape_cast %88 : vector<16xf32> to vector<16x1xf32>
      %90 = vector.broadcast %48 : f32 to vector<16x1xf32>
      %91 = arith.addf %89, %90 : vector<16x1xf32>
      %92 = math.tanh %91 : vector<16x1xf32>
      %93 = vector.broadcast %40 : vector<1x128xf32> to vector<16x128xf32>
      %94 = vector.broadcast %92 : vector<16x1xf32> to vector<16x128xf32>
      %95 = arith.mulf %93, %94 : vector<16x128xf32>
      %96 = arith.addf %75, %95 : vector<16x128xf32>
      %97 = arith.mulf %92, %92 : vector<16x1xf32>
      %cst_43 = arith.constant 1.000000e+00 : f32
      %98 = vector.broadcast %cst_43 : f32 to vector<16x1xf32>
      %99 = arith.subf %98, %97 : vector<16x1xf32>
      %100 = vector.broadcast %52 : f32 to vector<16x1xf32>
      %101 = arith.mulf %99, %100 : vector<16x1xf32>
      %cst_44 = arith.constant 1.000000e+00 : f32
      %102 = vector.broadcast %cst_44 : f32 to vector<16x1xf32>
      %103 = arith.addf %102, %101 : vector<16x1xf32>
      %104 = math.absf %103 : vector<16x1xf32>
      %105 = math.log %104 : vector<16x1xf32>
      %106 = arith.subf %85, %105 : vector<16x1xf32>
      %107 = vector.broadcast %45 : vector<1x128xf32> to vector<16x128xf32>
      %108 = arith.mulf %96, %107 : vector<16x128xf32>
      %cst_45 = arith.constant dense<0.000000e+00> : vector<16xf32>
      %109 = vector.multi_reduction <add>, %108, %cst_45 [1] : vector<16x128xf32> to vector<16xf32>
      %110 = vector.shape_cast %109 : vector<16xf32> to vector<16x1xf32>
      %111 = vector.broadcast %49 : f32 to vector<16x1xf32>
      %112 = arith.addf %110, %111 : vector<16x1xf32>
      %113 = math.tanh %112 : vector<16x1xf32>
      %114 = vector.broadcast %41 : vector<1x128xf32> to vector<16x128xf32>
      %115 = vector.broadcast %113 : vector<16x1xf32> to vector<16x128xf32>
      %116 = arith.mulf %114, %115 : vector<16x128xf32>
      %117 = arith.addf %96, %116 : vector<16x128xf32>
      %118 = arith.mulf %113, %113 : vector<16x1xf32>
      %cst_46 = arith.constant 1.000000e+00 : f32
      %119 = vector.broadcast %cst_46 : f32 to vector<16x1xf32>
      %120 = arith.subf %119, %118 : vector<16x1xf32>
      %121 = vector.broadcast %53 : f32 to vector<16x1xf32>
      %122 = arith.mulf %120, %121 : vector<16x1xf32>
      %cst_47 = arith.constant 1.000000e+00 : f32
      %123 = vector.broadcast %cst_47 : f32 to vector<16x1xf32>
      %124 = arith.addf %123, %122 : vector<16x1xf32>
      %125 = math.absf %124 : vector<16x1xf32>
      %126 = math.log %125 : vector<16x1xf32>
      %127 = arith.subf %106, %126 : vector<16x1xf32>
      %128 = vector.broadcast %46 : vector<1x128xf32> to vector<16x128xf32>
      %129 = arith.mulf %117, %128 : vector<16x128xf32>
      %cst_48 = arith.constant dense<0.000000e+00> : vector<16xf32>
      %130 = vector.multi_reduction <add>, %129, %cst_48 [1] : vector<16x128xf32> to vector<16xf32>
      %131 = vector.shape_cast %130 : vector<16xf32> to vector<16x1xf32>
      %132 = vector.broadcast %50 : f32 to vector<16x1xf32>
      %133 = arith.addf %131, %132 : vector<16x1xf32>
      %134 = math.tanh %133 : vector<16x1xf32>
      %135 = vector.broadcast %42 : vector<1x128xf32> to vector<16x128xf32>
      %136 = vector.broadcast %134 : vector<16x1xf32> to vector<16x128xf32>
      %137 = arith.mulf %135, %136 : vector<16x128xf32>
      %138 = arith.addf %117, %137 : vector<16x128xf32>
      %139 = arith.mulf %134, %134 : vector<16x1xf32>
      %cst_49 = arith.constant 1.000000e+00 : f32
      %140 = vector.broadcast %cst_49 : f32 to vector<16x1xf32>
      %141 = arith.subf %140, %139 : vector<16x1xf32>
      %142 = vector.broadcast %54 : f32 to vector<16x1xf32>
      %143 = arith.mulf %141, %142 : vector<16x1xf32>
      %cst_50 = arith.constant 1.000000e+00 : f32
      %144 = vector.broadcast %cst_50 : f32 to vector<16x1xf32>
      %145 = arith.addf %144, %143 : vector<16x1xf32>
      %146 = math.absf %145 : vector<16x1xf32>
      %147 = math.log %146 : vector<16x1xf32>
      %148 = arith.subf %127, %147 : vector<16x1xf32>
      %149 = arith.mulf %138, %138 : vector<16x128xf32>
      %cst_51 = arith.constant dense<0.000000e+00> : vector<16xf32>
      %150 = vector.multi_reduction <add>, %149, %cst_51 [1] : vector<16x128xf32> to vector<16xf32>
      %151 = vector.shape_cast %150 : vector<16xf32> to vector<16x1xf32>
      %cst_52 = arith.constant 5.000000e-01 : f32
      %152 = vector.broadcast %cst_52 : f32 to vector<16x1xf32>
      %153 = arith.mulf %152, %151 : vector<16x1xf32>
      %cst_53 = arith.constant -29.4060326 : f32
      %154 = vector.broadcast %cst_53 : f32 to vector<16x1xf32>
      %155 = arith.subf %154, %153 : vector<16x1xf32>
      %cst_54 = arith.constant 0.000000e+00 : f32
      %156 = vector.broadcast %cst_54 : f32 to vector<16x128xf32>
      %157 = arith.select %23, %138, %156 : vector<16x128xi1>, vector<16x128xf32>
      %158 = vector.shape_cast %148 : vector<16x1xf32> to vector<16x1xf32>
      %159 = vector.broadcast %158 : vector<16x1xf32> to vector<16x128xf32>
      %160 = arith.select %25, %159, %157 : vector<16x128xi1>, vector<16x128xf32>
      %161 = vector.shape_cast %155 : vector<16x1xf32> to vector<16x1xf32>
      %162 = vector.broadcast %161 : vector<16x1xf32> to vector<16x128xf32>
      %163 = arith.select %27, %162, %160 : vector<16x128xi1>, vector<16x128xf32>
      %c0_55 = arith.constant 0 : index
      %c0_56 = arith.constant 0 : index
      %c0_57 = arith.constant 0 : index
      %164 = vector.load %arg9[%c0_55, %c0_56, %c0_57] : memref<2x16x128xf32, #tpu.memory_space<vmem>>, vector<1x16x128xf32>
      %165 = vector.shape_cast %164 : vector<1x16x128xf32> to vector<16x128xf32>
      %166 = vector.shape_cast %163 : vector<16x128xf32> to vector<1x16x128xf32>
      tpu.vector_store %arg9[%c0_55, %c0_56, %c0_57], %166 {strides = array<i32>} : memref<2x16x128xf32, #tpu.memory_space<vmem>>, vector<1x16x128xf32>,
      %c1_58 = arith.constant 1 : index
      %c0_59 = arith.constant 0 : index
      %c0_60 = arith.constant 0 : index
      %167 = vector.load %arg5[%c1_58, %c0_59, %c0_60] : memref<2x16x128xf32, #tpu.memory_space<vmem>>, vector<1x16x128xf32>
      %168 = vector.shape_cast %167 : vector<1x16x128xf32> to vector<16x128xf32>
      %169 = arith.mulf %32, %168 : vector<16x128xf32>
      %170 = arith.addf %29, %169 : vector<16x128xf32>
      %171 = arith.mulf %168, %168 : vector<16x128xf32>
      %cst_61 = arith.constant dense<0.000000e+00> : vector<16xf32>
      %172 = vector.multi_reduction <add>, %171, %cst_61 [1] : vector<16x128xf32> to vector<16xf32>
      %173 = vector.shape_cast %172 : vector<16xf32> to vector<16x1xf32>
      %cst_62 = arith.constant 5.000000e-01 : f32
      %174 = vector.broadcast %cst_62 : f32 to vector<16x1xf32>
      %175 = arith.mulf %174, %173 : vector<16x1xf32>
      %176 = arith.subf %36, %175 : vector<16x1xf32>
      %177 = vector.broadcast %43 : vector<1x128xf32> to vector<16x128xf32>
      %178 = arith.mulf %170, %177 : vector<16x128xf32>
      %cst_63 = arith.constant dense<0.000000e+00> : vector<16xf32>
      %179 = vector.multi_reduction <add>, %178, %cst_63 [1] : vector<16x128xf32> to vector<16xf32>
      %180 = vector.shape_cast %179 : vector<16xf32> to vector<16x1xf32>
      %181 = vector.broadcast %47 : f32 to vector<16x1xf32>
      %182 = arith.addf %180, %181 : vector<16x1xf32>
      %183 = math.tanh %182 : vector<16x1xf32>
      %184 = vector.broadcast %39 : vector<1x128xf32> to vector<16x128xf32>
      %185 = vector.broadcast %183 : vector<16x1xf32> to vector<16x128xf32>
      %186 = arith.mulf %184, %185 : vector<16x128xf32>
      %187 = arith.addf %170, %186 : vector<16x128xf32>
      %188 = arith.mulf %183, %183 : vector<16x1xf32>
      %cst_64 = arith.constant 1.000000e+00 : f32
      %189 = vector.broadcast %cst_64 : f32 to vector<16x1xf32>
      %190 = arith.subf %189, %188 : vector<16x1xf32>
      %191 = vector.broadcast %51 : f32 to vector<16x1xf32>
      %192 = arith.mulf %190, %191 : vector<16x1xf32>
      %cst_65 = arith.constant 1.000000e+00 : f32
      %193 = vector.broadcast %cst_65 : f32 to vector<16x1xf32>
      %194 = arith.addf %193, %192 : vector<16x1xf32>
      %195 = math.absf %194 : vector<16x1xf32>
      %196 = math.log %195 : vector<16x1xf32>
      %197 = arith.subf %176, %196 : vector<16x1xf32>
      %198 = vector.broadcast %44 : vector<1x128xf32> to vector<16x128xf32>
      %199 = arith.mulf %187, %198 : vector<16x128xf32>
      %cst_66 = arith.constant dense<0.000000e+00> : vector<16xf32>
      %200 = vector.multi_reduction <add>, %199, %cst_66 [1] : vector<16x128xf32> to vector<16xf32>
      %201 = vector.shape_cast %200 : vector<16xf32> to vector<16x1xf32>
      %202 = vector.broadcast %48 : f32 to vector<16x1xf32>
      %203 = arith.addf %201, %202 : vector<16x1xf32>
      %204 = math.tanh %203 : vector<16x1xf32>
      %205 = vector.broadcast %40 : vector<1x128xf32> to vector<16x128xf32>
      %206 = vector.broadcast %204 : vector<16x1xf32> to vector<16x128xf32>
      %207 = arith.mulf %205, %206 : vector<16x128xf32>
      %208 = arith.addf %187, %207 : vector<16x128xf32>
      %209 = arith.mulf %204, %204 : vector<16x1xf32>
      %cst_67 = arith.constant 1.000000e+00 : f32
      %210 = vector.broadcast %cst_67 : f32 to vector<16x1xf32>
      %211 = arith.subf %210, %209 : vector<16x1xf32>
      %212 = vector.broadcast %52 : f32 to vector<16x1xf32>
      %213 = arith.mulf %211, %212 : vector<16x1xf32>
      %cst_68 = arith.constant 1.000000e+00 : f32
      %214 = vector.broadcast %cst_68 : f32 to vector<16x1xf32>
      %215 = arith.addf %214, %213 : vector<16x1xf32>
      %216 = math.absf %215 : vector<16x1xf32>
      %217 = math.log %216 : vector<16x1xf32>
      %218 = arith.subf %197, %217 : vector<16x1xf32>
      %219 = vector.broadcast %45 : vector<1x128xf32> to vector<16x128xf32>
      %220 = arith.mulf %208, %219 : vector<16x128xf32>
      %cst_69 = arith.constant dense<0.000000e+00> : vector<16xf32>
      %221 = vector.multi_reduction <add>, %220, %cst_69 [1] : vector<16x128xf32> to vector<16xf32>
      %222 = vector.shape_cast %221 : vector<16xf32> to vector<16x1xf32>
      %223 = vector.broadcast %49 : f32 to vector<16x1xf32>
      %224 = arith.addf %222, %223 : vector<16x1xf32>
      %225 = math.tanh %224 : vector<16x1xf32>
      %226 = vector.broadcast %41 : vector<1x128xf32> to vector<16x128xf32>
      %227 = vector.broadcast %225 : vector<16x1xf32> to vector<16x128xf32>
      %228 = arith.mulf %226, %227 : vector<16x128xf32>
      %229 = arith.addf %208, %228 : vector<16x128xf32>
      %230 = arith.mulf %225, %225 : vector<16x1xf32>
      %cst_70 = arith.constant 1.000000e+00 : f32
      %231 = vector.broadcast %cst_70 : f32 to vector<16x1xf32>
      %232 = arith.subf %231, %230 : vector<16x1xf32>
      %233 = vector.broadcast %53 : f32 to vector<16x1xf32>
      %234 = arith.mulf %232, %233 : vector<16x1xf32>
      %cst_71 = arith.constant 1.000000e+00 : f32
      %235 = vector.broadcast %cst_71 : f32 to vector<16x1xf32>
      %236 = arith.addf %235, %234 : vector<16x1xf32>
      %237 = math.absf %236 : vector<16x1xf32>
      %238 = math.log %237 : vector<16x1xf32>
      %239 = arith.subf %218, %238 : vector<16x1xf32>
      %240 = vector.broadcast %46 : vector<1x128xf32> to vector<16x128xf32>
      %241 = arith.mulf %229, %240 : vector<16x128xf32>
      %cst_72 = arith.constant dense<0.000000e+00> : vector<16xf32>
      %242 = vector.multi_reduction <add>, %241, %cst_72 [1] : vector<16x128xf32> to vector<16xf32>
      %243 = vector.shape_cast %242 : vector<16xf32> to vector<16x1xf32>
      %244 = vector.broadcast %50 : f32 to vector<16x1xf32>
      %245 = arith.addf %243, %244 : vector<16x1xf32>
      %246 = math.tanh %245 : vector<16x1xf32>
      %247 = vector.broadcast %42 : vector<1x128xf32> to vector<16x128xf32>
      %248 = vector.broadcast %246 : vector<16x1xf32> to vector<16x128xf32>
      %249 = arith.mulf %247, %248 : vector<16x128xf32>
      %250 = arith.addf %229, %249 : vector<16x128xf32>
      %251 = arith.mulf %246, %246 : vector<16x1xf32>
      %cst_73 = arith.constant 1.000000e+00 : f32
      %252 = vector.broadcast %cst_73 : f32 to vector<16x1xf32>
      %253 = arith.subf %252, %251 : vector<16x1xf32>
      %254 = vector.broadcast %54 : f32 to vector<16x1xf32>
      %255 = arith.mulf %253, %254 : vector<16x1xf32>
      %cst_74 = arith.constant 1.000000e+00 : f32
      %256 = vector.broadcast %cst_74 : f32 to vector<16x1xf32>
      %257 = arith.addf %256, %255 : vector<16x1xf32>
      %258 = math.absf %257 : vector<16x1xf32>
      %259 = math.log %258 : vector<16x1xf32>
      %260 = arith.subf %239, %259 : vector<16x1xf32>
      %261 = arith.mulf %250, %250 : vector<16x128xf32>
      %cst_75 = arith.constant dense<0.000000e+00> : vector<16xf32>
      %262 = vector.multi_reduction <add>, %261, %cst_75 [1] : vector<16x128xf32> to vector<16xf32>
      %263 = vector.shape_cast %262 : vector<16xf32> to vector<16x1xf32>
      %cst_76 = arith.constant 5.000000e-01 : f32
      %264 = vector.broadcast %cst_76 : f32 to vector<16x1xf32>
      %265 = arith.mulf %264, %263 : vector<16x1xf32>
      %cst_77 = arith.constant -29.4060326 : f32
      %266 = vector.broadcast %cst_77 : f32 to vector<16x1xf32>
      %267 = arith.subf %266, %265 : vector<16x1xf32>
      %cst_78 = arith.constant 0.000000e+00 : f32
      %268 = vector.broadcast %cst_78 : f32 to vector<16x128xf32>
      %269 = arith.select %23, %250, %268 : vector<16x128xi1>, vector<16x128xf32>
      %270 = vector.shape_cast %260 : vector<16x1xf32> to vector<16x1xf32>
      %271 = vector.broadcast %270 : vector<16x1xf32> to vector<16x128xf32>
      %272 = arith.select %25, %271, %269 : vector<16x128xi1>, vector<16x128xf32>
      %273 = vector.shape_cast %267 : vector<16x1xf32> to vector<16x1xf32>
      %274 = vector.broadcast %273 : vector<16x1xf32> to vector<16x128xf32>
      %275 = arith.select %27, %274, %272 : vector<16x128xi1>, vector<16x128xf32>
      %c1_79 = arith.constant 1 : index
      %c0_80 = arith.constant 0 : index
      %c0_81 = arith.constant 0 : index
      %276 = vector.load %arg9[%c1_79, %c0_80, %c0_81] : memref<2x16x128xf32, #tpu.memory_space<vmem>>, vector<1x16x128xf32>
      %277 = vector.shape_cast %276 : vector<1x16x128xf32> to vector<16x128xf32>
      %278 = vector.shape_cast %275 : vector<16x128xf32> to vector<1x16x128xf32>
      tpu.vector_store %arg9[%c1_79, %c0_80, %c0_81], %278 {strides = array<i32>} : memref<2x16x128xf32, #tpu.memory_space<vmem>>, vector<1x16x128xf32>,
    } else {
    }
    return
  }
  func.func @transform_0(%arg0: i32, %arg1: i32) -> (i32, i32) {
    %c0_i32 = arith.constant 0 : i32
    return %arg0, %arg1 : i32, i32
  }
  func.func @transform_1(%arg0: i32, %arg1: i32) -> (i32, i32) {
    %c0_i32 = arith.constant 0 : i32
    %c0_i32_0 = arith.constant 0 : i32
    %c0_i32_1 = arith.constant 0 : i32
    return %c0_i32, %c0_i32_0 : i32, i32
  }
  func.func @transform_2(%arg0: i32, %arg1: i32) -> (i32, i32) {
    %c0_i32 = arith.constant 0 : i32
    %c0_i32_0 = arith.constant 0 : i32
    %c0_i32_1 = arith.constant 0 : i32
    return %c0_i32, %c0_i32_0 : i32, i32
  }
  func.func @transform_3(%arg0: i32, %arg1: i32) -> (i32, i32, i32) {
    %c0_i32 = arith.constant 0 : i32
    %c0_i32_0 = arith.constant 0 : i32
    %c0_i32_1 = arith.constant 0 : i32
    return %c0_i32, %arg0, %c0_i32_0 : i32, i32, i32
  }
  func.func @transform_4(%arg0: i32, %arg1: i32) -> (i32, i32) {
    %c0_i32 = arith.constant 0 : i32
    %c0_i32_0 = arith.constant 0 : i32
    %c0_i32_1 = arith.constant 0 : i32
    return %c0_i32, %c0_i32_0 : i32, i32
  }
  func.func @transform_5(%arg0: i32, %arg1: i32) -> (i32, i32) {
    %c0_i32 = arith.constant 0 : i32
    %c0_i32_0 = arith.constant 0 : i32
    %c0_i32_1 = arith.constant 0 : i32
    return %c0_i32, %c0_i32_0 : i32, i32
  }
  func.func @transform_6(%arg0: i32, %arg1: i32) -> (i32, i32) {
    %c0_i32 = arith.constant 0 : i32
    %c0_i32_0 = arith.constant 0 : i32
    %c0_i32_1 = arith.constant 0 : i32
    return %c0_i32, %c0_i32_0 : i32, i32
  }
  func.func @transform_7(%arg0: i32, %arg1: i32) -> (i32, i32, i32) {
    %c0_i32 = arith.constant 0 : i32
    %c0_i32_0 = arith.constant 0 : i32
    %c0_i32_1 = arith.constant 0 : i32
    return %c0_i32, %arg0, %c0_i32_0 : i32, i32, i32
  }
}

</mosaic_0001>

<bundles_post_ra>
// kernel: tpu_custom_call.1
= control target key start
LH: loop header
LB: loop body
LE: loop exit
PB: predicated region body
PF: predicated region fallthrough
CT: control target
= control target key end

     0   :  { %s2039_s0 = inlined_call_operand.hbm [shape: f32[16,1024], index: 0, kind: input, shape index: {}]   ;;  %s2040_s1 = inlined_call_operand.hbm [shape: f32[1024,256], index: 1, kind: input, shape index: {}]   ;;  %s2041_s2 = inlined_call_operand.hbm [shape: f32[1,256], index: 2, kind: input, shape index: {}]   ;;  %s2042_s3 = inlined_call_operand.hbm [shape: f32[2,16,128], index: 3, kind: input, shape index: {}]   ;;  %s2043_s4 = inlined_call_operand.vmem [shape: f32[4,128], index: 4, kind: input, shape index: {}]   ;;  %s2044_s5 = inlined_call_operand.vmem [shape: f32[4,128], index: 5, kind: input, shape index: {}]   ;;  %s2045_s6 = inlined_call_operand.vmem [shape: f32[2,4], index: 6, kind: input, shape index: {}]   ;;  %s2046_s7 = inlined_call_operand.hbm [shape: f32[2,16,128], index: 7, kind: output, shape index: {}]  }
   0x1   :  { %2050 = sst [smem:[#allocation19_spill]] %s2039_s0 }
   0x2   :  { %12 = vsyncpa [#allocation4], 0 }
   0x3   :  { %14 = vsyncpa [#allocation4 + $0x1], 0 }
   0x4   :  { %15 = vsyncpa [#allocation8], 0 }
   0x5   :  { %16 = vsyncpa [#allocation11], 0 }
   0x6   :  { %17 = vsyncpa [#allocation6], 0 }
   0x7   :  { %18 = vsyncpa [#allocation5], 0  ;;  %s1614_s24 = smov 0   ;;  %s1616_s25 = smov 0  }
   0x8   :  { %s1618_s26 = smov 0   ;;  %s1620_s27 = smov 0  }
   0x9   :  { %s1622_s28 = smov 0   ;;  %s1624_s29 = smov 0  }
   0xa LB: > { %s2047_s30 = sadd.s32 4294967295, %s1558_s29   ;;  %p58_p0 = scmp.ne.s32.totalorder %s1542_s25, %s1538_s24  ;;  %s1558_s29 = sphi %s1624_s29, %s24_s29   ;;  %s1554_s28 = sphi %s1622_s28, %s2065_s28   ;;  %s1550_s27 = sphi %s1620_s27, %s2064_s27   ;;  %s1546_s26 = sphi %s1618_s26, %s2063_s26   ;;  %s1542_s25 = sphi %s1616_s25, %s2062_s25   ;;  %s1538_s24 = sphi %s1614_s24, %s2061_s24  }
   0xb   : > { %p1646_p1 = scmp.eq.s32.totalorder %s2047_s30, 0  ;;  %p1071_p2 = scmp.ge.s32.totalorder %s1558_s29, 1 }
   0xc   : > { %p226_p3 = scmp.lt.s32.totalorder %s1558_s29, 5  ;;  %s1560_s11 = smov [#allocation7]  }
   0xd   : > { %p1654_p4 = por %p1646_p1, %p58_p0  ;;  %s238_s12 = sshll.u32 %s1560_s11, 4  ;;  %s239_s12 = int_to_ptr.vmem [resolvable:$true] %s238_s12 }
   0xe   : > { %p1658_p5 = pnand %p1071_p2, %p226_p3  ;;  %s1561_s14 = smov [#allocation9]  }
   0xf   : > { %s252_s15 = sshll.u32 %s1561_s14, 4  ;;  %s1562_s16 = smov [#allocation10]   ;;  %s253_s15 = int_to_ptr.vmem [resolvable:$true] %s252_s15 }
  0x10   : > { %p1190_p6 = pneg %p1658_p5  ;;  %s265_s17 = sshll.u32 %s1562_s16, 4  ;;  %s266_s17 = int_to_ptr.vmem [resolvable:$true] %s265_s17 }
  0x11   : > { %s1358_s18 = scalar_lea.vmem %s239_s12, 32768  ;;  %p1366_p12 = scmp.lt.s32.totalorder %s239_s12, %s239_s12 }
  0x12   : > { %p1666_p7 = pnand %p1190_p6, %p1646_p1  ;;  %p1359_p9 = scmp.ne.s32.totalorder %s239_s12, %s1358_s18 }
  0x13   : > { %p1367_p13 = scmp.lt.s32.totalorder %s1358_s18, %s1358_s18 }
  0x14   : > { %p1349_p8 = pneg %p1666_p7 }
  0x15   : > { %p1368_p0 = por %p1367_p13, %p1366_p12 }
  0x16   : > { %p1361_p10 = pnand %p1359_p9, %p1349_p8 }
  0x18   : > { %p1362_p11 = pneg %p1361_p10 }
  0x1a   : > { %p1369_p2 = pnand %p1368_p0, %p1362_p11 }
  0x1c   : > { %1372 = shalt.err (!%p1369_p2)
}
  0x1d   : > { %s2048_s19 = smov 256   ;;  %s2049_s20 = smov 16  }
  0x1e   : > { %1193 = dma.hbm_to_vmem [thread:$0]  (!%p1666_p7), %s2040_s1, 32768, %s239_s12, [#allocation8], %s2048_s19, %s2048_s19, %s2049_s20  }
  0x1f   : > { %s1384_s23 = scalar_lea.vmem %s253_s15, 32  ;;  %p1392_p10 = scmp.lt.s32.totalorder %s253_s15, %s253_s15 }
  0x20   : > { %p1385_p3 = scmp.ne.s32.totalorder %s253_s15, %s1384_s23  ;;  %p1393_p11 = scmp.lt.s32.totalorder %s1384_s23, %s1384_s23 }
  0x22   : > { %p1387_p6 = pnand %p1385_p3, %p1349_p8  ;;  %p1394_p12 = por %p1393_p11, %p1392_p10 }
  0x24   : > { %p1388_p9 = pneg %p1387_p6 }
  0x26   : > { %p1395_p13 = pnand %p1394_p12, %p1388_p9 }
  0x28   : > { %1398 = shalt.err (!%p1395_p13)
}
  0x29   : > { %1196 = dma.hbm_to_vmem [thread:$0]  (!%p1666_p7), %s2041_s2, 32, %s253_s15, [#allocation8]  }
  0x2a   : > { %s285_s16 = sshll.u32 %s2045_s6, 4  ;;  %s1410_s18 = scalar_lea.vmem %s266_s17, 512  ;;  %s286_s16 = int_to_ptr.vmem [resolvable:$true] %s285_s16 }
  0x2b   : > { %p1411_p0 = scmp.ne.s32.totalorder %s266_s17, %s1410_s18  ;;  %p1418_p6 = scmp.lt.s32.totalorder %s266_s17, %s266_s17 }
  0x2c   : > { %p1419_p9 = scmp.lt.s32.totalorder %s1410_s18, %s1410_s18 }
  0x2d   : > { %p1413_p2 = pnand %p1411_p0, %p1349_p8 }
  0x2e   : > { %p1420_p10 = por %p1419_p9, %p1418_p6 }
  0x2f   : > { %p1414_p3 = pneg %p1413_p2 }
  0x31   : > { %p1421_p11 = pnand %p1420_p10, %p1414_p3 }
  0x33   : > { %1424 = shalt.err (!%p1421_p11)
}
  0x34   : > { %s1565_s21 = smov 128   ;;  %s1566_s15 = smov 8  }
  0x35   : > { %1199 = dma.hbm_to_vmem [thread:$0]  (!%p1666_p7), %s2042_s3, 512, %s266_s17, [#allocation11], %s1565_s21, %s1565_s21, %s1566_s15  }
  0x36   : > { %s1425_s24 = scalar_lea.vmem %s286_s16, 32  ;;  %p1433_p2 = scmp.lt.s32.totalorder %s286_s16, %s286_s16 }
  0x37   : > { %p1426_p12 = scmp.ne.s32.totalorder %s286_s16, %s1425_s24  ;;  %p1434_p6 = scmp.lt.s32.totalorder %s1425_s24, %s1425_s24 }
  0x39   : > { %p1428_p13 = pnand %p1426_p12, %p1349_p8  ;;  %p1435_p3 = por %p1434_p6, %p1433_p2 }
  0x3b   : > { %p1429_p0 = pneg %p1428_p13 }
  0x3d   : > { %p1436_p9 = pnand %p1435_p3, %p1429_p0 }
  0x3f   : > { %1439 = shalt.err (!%p1436_p9)
}
  0x40   : > { %s1567_s11 = smov [#allocation12]   ;;  %s33_s17 = sadd.s32 1, %s1554_s28 }
  0x41   : > { %1202 = dma.vmem_to_smem (!%p1666_p7), %s286_s16, 32, %s1567_s11, [#allocation6]  }
  0x42   : > { %s45_s12 = sadd.s32 1, %s1546_s26  ;;  %p34_p8 = scmp.ge.s32.totalorder %s33_s17, 4 }
  0x43   : > { %p52_p10 = scmp.ne.s32.totalorder %s1546_s26, %s1542_s25  ;;  %p53_p11 = scmp.eq.s32.totalorder %s1558_s29, 0 }
  0x44   : > { %p1211_p12 = scmp.lt.s32.totalorder %s1558_s29, 4  ;;  %s2067_s17 = smov (%p34_p8, %s33_s17), 0 }
  0x45   : > { %p54_p13 = por %p53_p11, %p52_p10  ;;  %s296_s13 = sand.u32 1, %s1546_s26  }
  0x46   : > { %s41_s14 = ssub.s32 %s1554_s28, %s2067_s17  ;;  %s1077_s18 = sshll.u32 %s296_s13, 5 }
  0x47   : > { %p43_p0 = scmp.eq.s32.totalorder %s41_s14, 0  ;;  %s1102_s21 = sshll.u32 %s1554_s28, 8 }
  0x48   : > { %s2055_s0 = sld [smem:[#allocation19_spill]]  ;;  %s300_s24 = scalar_lea.vmem [#allocation3], %s1077_s18 }
  0x49   : > { %s1720_s15 = scalar_select %p43_p0, %s1546_s26, %s45_s12  }
  0x4a   : > { %s310_s11 = sshll.u32 %s300_s24, 4  ;;  %p1727_p7 = pnand %p1211_p12, %p54_p13  ;;  %s311_s11 = int_to_ptr.vmem [resolvable:$true] %s310_s11 }
  0x4b   : > { %s297_s19 = scalar_lea.sflag [#allocation4], %s296_s13  ;;  %s1453_s14 = scalar_lea.vmem %s311_s11, 512 }
  0x4c   : > { %p1442_p2 = pneg %p1727_p7  ;;  %p1454_p6 = scmp.ne.s32.totalorder %s311_s11, %s1453_s14 }
  0x4d   : > { %s1568_s12 = smov [#allocation3]  }
  0x4e   : > { %s309_s23 = scalar_lea.hbm %s2055_s0, %s1102_s21  ;;  %p1456_p3 = pnand %p1454_p6, %p1442_p2 }
  0x4f   : > { %s1458_s20 = sshll.u32 %s1568_s12, 4  ;;  %s1459_s20 = int_to_ptr.vmem [resolvable:$false] %s1458_s20 }
  0x50   : > { %p1457_p9 = pneg %p1456_p3  ;;  %s1460_s21 = scalar_lea.vmem %s1459_s20, 1024 }
  0x51   : > { %p1461_p8 = scmp.lt.s32.totalorder %s311_s11, %s1459_s20  ;;  %p1462_p10 = scmp.lt.s32.totalorder %s1460_s21, %s1453_s14 }
  0x53   : > { %p1463_p11 = por %p1462_p10, %p1461_p8 }
  0x55   : > { %p1464_p0 = pnand %p1463_p11, %p1457_p9 }
  0x57   : > { %1467 = shalt.err (!%p1464_p0)
}
  0x58   : > { %s1569_s18 = smov 1024   ;;  %s2057_s22 = smov 16  }
  0x59   : > { %s2058_s13 = smov 256   ;;  %322 = sbr.rel (%p1658_p5) target bundleno = 1225 (0x4c9), region = 48 }
  0x5a   : > { %1206 = dma.hbm_to_vmem [thread:$0]  (!%p1727_p7), %s309_s23, 512, %s311_s11, %s297_s19, %s1569_s18, %s2058_s13, %s2057_s22  }
  0x5b   : > { %s324_s16 = sand.u32 (!%p1658_p5), 1, %s1542_s25  }
  0x5c   : > { %s1081_s24 = sshll.u32 (!%p1658_p5), %s324_s16, 5  ;;  %s325_s12 = scalar_lea.sflag (!%p1658_p5), [#allocation4], %s324_s16 }
  0x5d   : > { %s1740_s0 = scalar_lea.vmem (!%p1658_p5), [#allocation3], %s1081_s24 }
  0x5e   : > { %1517 = dma.done.wait (%p1654_p4), %s325_s12, 512  }
  0x5f   : > { %1519 = vsyncadd (%p1654_p4), %s325_s12, 4294966784 }
  0x60   : > { %1521 = dma.done.wait (%p1646_p1), [#allocation8], 32800  }
  0x61   : > { %1523 = vsyncadd (%p1646_p1), [#allocation8], 4294934496 }
  0x62   : > { %1525 = dma.done.wait (%p1646_p1), [#allocation11], 512  }
  0x63   : > { %1527 = vsyncadd (%p1646_p1), [#allocation11], 4294966784 }
  0x64   : > { %1529 = dma.done.wait (%p1646_p1), [#allocation6], 32  }
  0x65   : > { %1531 = vsyncadd (%p1646_p1), [#allocation6], 4294967264 }
  0x66   : > { %349 = sfence }
  0x67   : > { %p1086_p4 = scmp.ne.s32.totalorder %s1550_s27, 0 }
  0x69   : > { %378 = sbr.rel (%p1086_p4) target bundleno = 113 (0x71), region = 72 }
  0x6e   : > { %v1570_v0 = vmov 0.0  }
  0x6f   : > { %379 = vst [vmem:[#allocation2 + $0x10] sm:$0xff] %v1570_v0  ;;  %380 = vst [vmem:[#allocation2] sm:$0xff] %v1570_v0 }
  0x70   : > { %381 = vst [vmem:[#allocation2 + $0x18] sm:$0xff] %v1570_v0  ;;  %382 = vst [vmem:[#allocation2 + $0x8] sm:$0xff] %v1570_v0 }
  0x71 PF: > { %s1087_s30 = sshll.u32 %s1550_s27, 8  ;;  %v458_v1 = vld [vmem:[%s1740_s0 + $0x8] sm:$0xff]  ;;  %v460_v2 = vld [vmem:[%s1740_s0 + $0x18] sm:$0xff]  ;;  %p1090_p1 = scmp.ne.s32.totalorder %s1550_s27, 3 }
  0x72   : > { %s384_s9 = sshra.s32 %s1087_s30, 3  ;;  %525 = vmatprep.mubr.f32.mxu0 %v458_v1  ;;  %531 = vmatprep.mubr.f32.mxu1 %v460_v2  ;;  %s591_s19 = sld [smem:[#allocation12]] (!%p1090_p1) }
  0x73   : > { %s1103_s8 = sshll.u32 %s384_s9, 4  ;;  %s1091_s11 = sld [smem:[#allocation12 + $0x1]] (!%p1090_p1) }
  0x74   : > { %s1762_s10 = scalar_lea.vmem [#allocation7], %s1103_s8  ;;  %s1092_s14 = sld [smem:[#allocation12 + $0x2]] (!%p1090_p1) }
  0x75   : > { %v420_v3 = vld [vmem:[%s1762_s10 + $0xf8] sm:$0xff]  ;;  %v419_v4 = vld [vmem:[%s1762_s10 + $0xf0] sm:$0xff]  ;;  %v418_v5 = vld [vmem:[%s1762_s10 + $0xe8] sm:$0xff]  ;;  %s1094_s21 = sld [smem:[#allocation12 + $0x80]] (!%p1090_p1) }
  0x76   : > { %461 = vmatprep.subr.mxu0 %v420_v3  ;;  %1104 = vmatprep.subr.mxu1 %v420_v3  ;;  %v417_v6 = vld [vmem:[%s1762_s10 + $0xe0] sm:$0xff]  ;;  %v416_v7 = vld [vmem:[%s1762_s10 + $0xd8] sm:$0xff]  ;;  %v415_v8 = vld [vmem:[%s1762_s10 + $0xd0] sm:$0xff]  ;;  %s1095_s18 = sld [smem:[#allocation12 + $0x81]] (!%p1090_p1) }
  0x77   : > { %462 = vmatpush1.msra.mxu0 %v419_v4  ;;  %1136 = vmatpush1.msra.mxu1 %v419_v4  ;;  %v414_v9 = vld [vmem:[%s1762_s10 + $0xc8] sm:$0xff]  ;;  %v413_v10 = vld [vmem:[%s1762_s10 + $0xc0] sm:$0xff]  ;;  %v412_v11 = vld [vmem:[%s1762_s10 + $0xb8] sm:$0xff]  ;;  %s1096_s22 = sld [smem:[#allocation12 + $0x82]] (!%p1090_p1) }
  0x78   : > { %463 = vmatprep.subr.mxu0 %v418_v5  ;;  %1105 = vmatprep.subr.mxu1 %v418_v5  ;;  %v411_v12 = vld [vmem:[%s1762_s10 + $0xb0] sm:$0xff]  ;;  %v410_v13 = vld [vmem:[%s1762_s10 + $0xa8] sm:$0xff]  ;;  %v409_v14 = vld [vmem:[%s1762_s10 + $0xa0] sm:$0xff]  ;;  %s1093_s13 = sld [smem:[#allocation12 + $0x3]] (!%p1090_p1) }
  0x79   : > { %464 = vmatpush1.msra.mxu0 %v417_v6  ;;  %1137 = vmatpush1.msra.mxu1 %v417_v6  ;;  %v408_v15 = vld [vmem:[%s1762_s10 + $0x98] sm:$0xff]  ;;  %v407_v16 = vld [vmem:[%s1762_s10 + $0x90] sm:$0xff]  ;;  %v406_v17 = vld [vmem:[%s1762_s10 + $0x88] sm:$0xff]  ;;  %s1097_s16 = sld [smem:[#allocation12 + $0x83]] (!%p1090_p1) }
  0x7a   : > { %465 = vmatprep.subr.mxu0 %v416_v7  ;;  %1106 = vmatprep.subr.mxu1 %v416_v7  ;;  %v405_v18 = vld [vmem:[%s1762_s10 + $0x80] sm:$0xff]  ;;  %v404_v19 = vld [vmem:[%s1762_s10 + $0x78] sm:$0xff]  ;;  %v403_v20 = vld [vmem:[%s1762_s10 + $0x70] sm:$0xff] }
  0x7b   : > { %466 = vmatpush1.msra.mxu0 %v415_v8  ;;  %1138 = vmatpush1.msra.mxu1 %v415_v8  ;;  %v402_v21 = vld [vmem:[%s1762_s10 + $0x68] sm:$0xff]  ;;  %v401_v22 = vld [vmem:[%s1762_s10 + $0x60] sm:$0xff]  ;;  %v400_v23 = vld [vmem:[%s1762_s10 + $0x58] sm:$0xff] }
  0x7c   : > { %467 = vmatprep.subr.mxu0 %v414_v9  ;;  %1107 = vmatprep.subr.mxu1 %v414_v9  ;;  %v399_v24 = vld [vmem:[%s1762_s10 + $0x50] sm:$0xff]  ;;  %v398_v25 = vld [vmem:[%s1762_s10 + $0x48] sm:$0xff]  ;;  %v397_v26 = vld [vmem:[%s1762_s10 + $0x40] sm:$0xff] }
  0x7d   : > { %468 = vmatpush1.msra.mxu0 %v413_v10  ;;  %1139 = vmatpush1.msra.mxu1 %v413_v10  ;;  %v396_v27 = vld [vmem:[%s1762_s10 + $0x38] sm:$0xff]  ;;  %v395_v28 = vld [vmem:[%s1762_s10 + $0x30] sm:$0xff]  ;;  %v394_v29 = vld [vmem:[%s1762_s10 + $0x28] sm:$0xff] }
  0x7e   : > { %469 = vmatprep.subr.mxu0 %v412_v11  ;;  %1108 = vmatprep.subr.mxu1 %v412_v11  ;;  %v393_v30 = vld [vmem:[%s1762_s10 + $0x20] sm:$0xff]  ;;  %v392_v31 = vld [vmem:[%s1762_s10 + $0x18] sm:$0xff]  ;;  %v391_v32 = vld [vmem:[%s1762_s10 + $0x10] sm:$0xff] }
  0x7f   : > { %470 = vmatpush1.msra.mxu0 %v411_v12  ;;  %1140 = vmatpush1.msra.mxu1 %v411_v12  ;;  %v390_v33 = vld [vmem:[%s1762_s10 + $0x8] sm:$0xff]  ;;  %v389_v34 = vld [vmem:[%s1762_s10] sm:$0xff]  ;;  %v452_v35 = vld [vmem:[%s1762_s10 + $0x1f8] sm:$0xff] }
  0x80   : > { %471 = vmatprep.subr.mxu0 %v410_v13  ;;  %1109 = vmatprep.subr.mxu1 %v410_v13  ;;  %v451_v36 = vld [vmem:[%s1762_s10 + $0x1f0] sm:$0xff]  ;;  %v450_v37 = vld [vmem:[%s1762_s10 + $0x1e8] sm:$0xff]  ;;  %v449_v38 = vld [vmem:[%s1762_s10 + $0x1e0] sm:$0xff] }
  0x81   : > { %472 = vmatpush1.msra.mxu0 %v409_v14  ;;  %1141 = vmatpush1.msra.mxu1 %v409_v14  ;;  %v448_v39 = vld [vmem:[%s1762_s10 + $0x1d8] sm:$0xff]  ;;  %v447_v40 = vld [vmem:[%s1762_s10 + $0x1d0] sm:$0xff]  ;;  %v446_v41 = vld [vmem:[%s1762_s10 + $0x1c8] sm:$0xff] }
  0x82   : > { %473 = vmatprep.subr.mxu0 %v408_v15  ;;  %1110 = vmatprep.subr.mxu1 %v408_v15  ;;  %v445_v42 = vld [vmem:[%s1762_s10 + $0x1c0] sm:$0xff]  ;;  %v444_v43 = vld [vmem:[%s1762_s10 + $0x1b8] sm:$0xff]  ;;  %v443_v44 = vld [vmem:[%s1762_s10 + $0x1b0] sm:$0xff] }
  0x83   : > { %474 = vmatpush1.msra.mxu0 %v407_v16  ;;  %1142 = vmatpush1.msra.mxu1 %v407_v16  ;;  %v442_v45 = vld [vmem:[%s1762_s10 + $0x1a8] sm:$0xff]  ;;  %v441_v46 = vld [vmem:[%s1762_s10 + $0x1a0] sm:$0xff]  ;;  %v440_v47 = vld [vmem:[%s1762_s10 + $0x198] sm:$0xff] }
  0x84   : > { %475 = vmatprep.subr.mxu0 %v406_v17  ;;  %1111 = vmatprep.subr.mxu1 %v406_v17  ;;  %v439_v48 = vld [vmem:[%s1762_s10 + $0x190] sm:$0xff]  ;;  %v438_v49 = vld [vmem:[%s1762_s10 + $0x188] sm:$0xff]  ;;  %v437_v50 = vld [vmem:[%s1762_s10 + $0x180] sm:$0xff] }
  0x85   : > { %476 = vmatpush1.msra.mxu0 %v405_v18  ;;  %1143 = vmatpush1.msra.mxu1 %v405_v18  ;;  %v436_v51 = vld [vmem:[%s1762_s10 + $0x178] sm:$0xff]  ;;  %v435_v52 = vld [vmem:[%s1762_s10 + $0x170] sm:$0xff]  ;;  %v434_v53 = vld [vmem:[%s1762_s10 + $0x168] sm:$0xff] }
  0x86   : > { %477 = vmatprep.subr.mxu0 %v404_v19  ;;  %1112 = vmatprep.subr.mxu1 %v404_v19  ;;  %v433_v54 = vld [vmem:[%s1762_s10 + $0x160] sm:$0xff]  ;;  %v432_v55 = vld [vmem:[%s1762_s10 + $0x158] sm:$0xff]  ;;  %v431_v56 = vld [vmem:[%s1762_s10 + $0x150] sm:$0xff] }
  0x87   : > { %478 = vmatpush1.msra.mxu0 %v403_v20  ;;  %1144 = vmatpush1.msra.mxu1 %v403_v20  ;;  %v430_v57 = vld [vmem:[%s1762_s10 + $0x148] sm:$0xff]  ;;  %v429_v58 = vld [vmem:[%s1762_s10 + $0x140] sm:$0xff]  ;;  %v428_v59 = vld [vmem:[%s1762_s10 + $0x138] sm:$0xff] }
  0x88   : > { %479 = vmatprep.subr.mxu0 %v402_v21  ;;  %1113 = vmatprep.subr.mxu1 %v402_v21  ;;  %v427_v60 = vld [vmem:[%s1762_s10 + $0x130] sm:$0xff]  ;;  %v426_v61 = vld [vmem:[%s1762_s10 + $0x128] sm:$0xff]  ;;  %v425_v62 = vld [vmem:[%s1762_s10 + $0x120] sm:$0xff] }
  0x89   : > { %480 = vmatpush1.msra.mxu0 %v401_v22  ;;  %1145 = vmatpush1.msra.mxu1 %v401_v22  ;;  %v424_v63 = vld [vmem:[%s1762_s10 + $0x118] sm:$0xff]  ;;  %v423_v0 = vld [vmem:[%s1762_s10 + $0x110] sm:$0xff]  ;;  %v422_v1 = vld [vmem:[%s1762_s10 + $0x108] sm:$0xff] }
  0x8a   : > { %481 = vmatprep.subr.mxu0 %v400_v23  ;;  %1114 = vmatprep.subr.mxu1 %v400_v23  ;;  %v421_v2 = vld [vmem:[%s1762_s10 + $0x100] sm:$0xff]  ;;  %v459_v4 = vld [vmem:[%s1740_s0 + $0x10] sm:$0xff]  ;;  %v455_v6 = vld [vmem:[#allocation2 + $0x18] sm:$0xff] }
  0x8b   : > { %482 = vmatpush1.msra.mxu0 %v399_v24  ;;  %1146 = vmatpush1.msra.mxu1 %v399_v24  ;;  %v457_v3 = vld [vmem:[%s1740_s0] sm:$0xff]  ;;  %v453_v5 = vld [vmem:[#allocation2 + $0x10] sm:$0xff]  ;;  %v456_v10 = vld [vmem:[#allocation2 + $0x8] sm:$0xff] }
  0x8c   : > { %483 = vmatprep.subr.mxu0 %v398_v25  ;;  %1115 = vmatprep.subr.mxu1 %v398_v25  ;;  %v454_v9 = vld [vmem:[#allocation2] sm:$0xff] }
  0x8d   : > { %484 = vmatpush1.msra.mxu0 %v397_v26  ;;  %1147 = vmatpush1.msra.mxu1 %v397_v26 }
  0x8e   : > { %485 = vmatprep.subr.mxu0 %v396_v27  ;;  %1116 = vmatprep.subr.mxu1 %v396_v27 }
  0x8f   : > { %486 = vmatpush1.msra.mxu0 %v395_v28  ;;  %1148 = vmatpush1.msra.mxu1 %v395_v28 }
  0x90   : > { %487 = vmatprep.subr.mxu0 %v394_v29  ;;  %1117 = vmatprep.subr.mxu1 %v394_v29 }
  0x91   : > { %488 = vmatpush1.msra.mxu0 %v393_v30  ;;  %1149 = vmatpush1.msra.mxu1 %v393_v30 }
  0x92   : > { %489 = vmatprep.subr.mxu0 %v392_v31  ;;  %1118 = vmatprep.subr.mxu1 %v392_v31 }
  0x93   : > { %490 = vmatpush1.msra.mxu0 %v391_v32  ;;  %1150 = vmatpush1.msra.mxu1 %v391_v32 }
  0x94   : > { %491 = vmatprep.subr.mxu0 %v390_v33  ;;  %1119 = vmatprep.subr.mxu1 %v390_v33 }
  0x95   : > { %492 = vmatpush1.msra.mxu0 %v389_v34  ;;  %1151 = vmatpush1.msra.mxu1 %v389_v34 }
  0x96   : > { %493 = vmatprep.subr.mxu0 %v452_v35  ;;  %1120 = vmatprep.subr.mxu1 %v452_v35 }
  0x97   : > { %494 = vmatpush2.msra.mxu0 %v451_v36  ;;  %1152 = vmatpush2.msra.mxu1 %v451_v36 }
  0x98   : > { %495 = vmatprep.subr.mxu0 %v450_v37  ;;  %1121 = vmatprep.subr.mxu1 %v450_v37 }
  0x99   : > { %496 = vmatpush2.msra.mxu0 %v449_v38  ;;  %1153 = vmatpush2.msra.mxu1 %v449_v38 }
  0x9a   : > { %497 = vmatprep.subr.mxu0 %v448_v39  ;;  %1122 = vmatprep.subr.mxu1 %v448_v39 }
  0x9b   : > { %498 = vmatpush2.msra.mxu0 %v447_v40  ;;  %1154 = vmatpush2.msra.mxu1 %v447_v40 }
  0x9c   : > { %499 = vmatprep.subr.mxu0 %v446_v41  ;;  %1123 = vmatprep.subr.mxu1 %v446_v41 }
  0x9d   : > { %500 = vmatpush2.msra.mxu0 %v445_v42  ;;  %1155 = vmatpush2.msra.mxu1 %v445_v42 }
  0x9e   : > { %501 = vmatprep.subr.mxu0 %v444_v43  ;;  %1124 = vmatprep.subr.mxu1 %v444_v43 }
  0x9f   : > { %502 = vmatpush2.msra.mxu0 %v443_v44  ;;  %1156 = vmatpush2.msra.mxu1 %v443_v44 }
  0xa0   : > { %503 = vmatprep.subr.mxu0 %v442_v45  ;;  %1125 = vmatprep.subr.mxu1 %v442_v45 }
  0xa1   : > { %504 = vmatpush2.msra.mxu0 %v441_v46  ;;  %1157 = vmatpush2.msra.mxu1 %v441_v46 }
  0xa2   : > { %505 = vmatprep.subr.mxu0 %v440_v47  ;;  %1126 = vmatprep.subr.mxu1 %v440_v47 }
  0xa3   : > { %506 = vmatpush2.msra.mxu0 %v439_v48  ;;  %1158 = vmatpush2.msra.mxu1 %v439_v48 }
  0xa4   : > { %507 = vmatprep.subr.mxu0 %v438_v49  ;;  %1127 = vmatprep.subr.mxu1 %v438_v49 }
  0xa5   : > { %508 = vmatpush2.msra.mxu0 %v437_v50  ;;  %1159 = vmatpush2.msra.mxu1 %v437_v50 }
  0xa6   : > { %509 = vmatprep.subr.mxu0 %v436_v51  ;;  %1128 = vmatprep.subr.mxu1 %v436_v51 }
  0xa7   : > { %510 = vmatpush2.msra.mxu0 %v435_v52  ;;  %1160 = vmatpush2.msra.mxu1 %v435_v52 }
  0xa8   : > { %511 = vmatprep.subr.mxu0 %v434_v53  ;;  %1129 = vmatprep.subr.mxu1 %v434_v53 }
  0xa9   : > { %512 = vmatpush2.msra.mxu0 %v433_v54  ;;  %1161 = vmatpush2.msra.mxu1 %v433_v54 }
  0xaa   : > { %513 = vmatprep.subr.mxu0 %v432_v55  ;;  %1130 = vmatprep.subr.mxu1 %v432_v55 }
  0xab   : > { %514 = vmatpush2.msra.mxu0 %v431_v56  ;;  %1162 = vmatpush2.msra.mxu1 %v431_v56 }
  0xac   : > { %515 = vmatprep.subr.mxu0 %v430_v57  ;;  %1131 = vmatprep.subr.mxu1 %v430_v57 }
  0xad   : > { %516 = vmatpush2.msra.mxu0 %v429_v58  ;;  %1163 = vmatpush2.msra.mxu1 %v429_v58 }
  0xae   : > { %517 = vmatprep.subr.mxu0 %v428_v59  ;;  %1132 = vmatprep.subr.mxu1 %v428_v59 }
  0xaf   : > { %518 = vmatpush2.msra.mxu0 %v427_v60  ;;  %1164 = vmatpush2.msra.mxu1 %v427_v60 }
  0xb0   : > { %519 = vmatprep.subr.mxu0 %v426_v61  ;;  %1133 = vmatprep.subr.mxu1 %v426_v61 }
  0xb1   : > { %520 = vmatpush2.msra.mxu0 %v425_v62  ;;  %1165 = vmatpush2.msra.mxu1 %v425_v62 }
  0xb2   : > { %521 = vmatprep.subr.mxu0 %v424_v63  ;;  %1134 = vmatprep.subr.mxu1 %v424_v63 }
  0xb3   : > { %522 = vmatpush2.msra.mxu0 %v423_v0  ;;  %1166 = vmatpush2.msra.mxu1 %v423_v0 }
  0xb4   : > { %523 = vmatprep.subr.mxu0 %v422_v1  ;;  %1135 = vmatprep.subr.mxu1 %v422_v1 }
  0xb5   : > { %524 = vmatpush2.msra.mxu0 %v421_v2  ;;  %1167 = vmatpush2.msra.mxu1 %v421_v2 }
  0xb6   : > { %526 = vmatmul.mubr.f32.vlgmr.msra.gmra.mxu0 %v457_v3  ;;  %532 = vmatmul.mubr.f32.vlgmr.msra.gmra.mxu1 %v459_v4 }
 0x176   : > { %v527_v7 = vpop.f32.mrf.mxu0  ;;  %v533_v8 = vpop.f32.mrf.mxu1 }
 0x177   : > { %v538_v11 = vadd.f32 %v527_v7, %v453_v5  ;;  %v540_v12 = vadd.f32 %v533_v8, %v455_v6  ;;  %549 = sbr.rel (%p1090_p1) target bundleno = 1209 (0x4b9), region = 76 }
 0x178   : > { %v529_v13 = vpop.f32.mrf.mxu0  ;;  %v535_v14 = vpop.f32.mrf.mxu1 }
 0x179   : > { %542 = vst [vmem:[#allocation2 + $0x10] sm:$0xff] %v538_v11  ;;  %544 = vst [vmem:[#allocation2 + $0x18] sm:$0xff] %v540_v12  ;;  %v539_v15 = vadd.f32 %v529_v13, %v454_v9  ;;  %v541_v16 = vadd.f32 %v535_v14, %v456_v10 }
 0x17b   : > { %543 = vst [vmem:[#allocation2] sm:$0xff] %v539_v15  ;;  %545 = vst [vmem:[#allocation2 + $0x8] sm:$0xff] %v541_v16 }
 0x17c   : > { %v556_v17 = vlaneseq  ;;  %v554_v19 = vld [vmem:[#allocation9] sm:$0x3]  ;;  %v1856_v38 = vld [vmem:[#allocation10] sm:$0xff]  ;;  %v1858_v39 = vld [vmem:[#allocation10 + $0x10] sm:$0xff]  ;;  %v625_v59 = vstv %s591_s19 }
 0x17d   : > { %v1854_v37 = vld [vmem:[%s2044_s5] sm:$0xf]  ;;  %v1860_v40 = vld [vmem:[#allocation10 + $0x8] sm:$0xff] }
 0x17e   : > { %v1831_v18 = vshrl.u32 %v556_v17, 7  ;;  %v1833_v20 = vand.u32 127, %v556_v17  ;;  %v1862_v41 = vld [vmem:[#allocation10 + $0x18] sm:$0xff] }
 0x17f   : > { %v1876_v4 = vld [vmem:[%s2043_s4] sm:$0xf] }
 0x180   : > { %v1836_v21 = vsub.s32 1, %v1831_v18  ;;  %vm572_vm0 = vcmp.lt.s32.totalorder %v1833_v20, 32  ;;  %v558_v31 = vsub.s32 0, %v1831_v18  ;;  %v550_v33 = vld [vmem:[#allocation2 + $0x10] sm:$0xff]  ;;  %v552_v34 = vld [vmem:[#allocation2 + $0x18] sm:$0xff]  ;;  %vm573_vm1 = vcmp.eq.s32.totalorder %v1833_v20, 32 }
 0x181   : > { %vm574_vm2 = vcmp.eq.s32.totalorder %v1833_v20, 33 }
 0x182   : > { %v551_v22 = vld [vmem:[#allocation2] sm:$0xff]  ;;  %v553_v23 = vld [vmem:[#allocation2 + $0x8] sm:$0xff]  ;;  %v563_v24 = vrot.slane %v554_v19, %v1836_v21  ;;  %v559_v32 = vrot.slane %v554_v19, %v558_v31  ;;  %v618_v46 = vrot.slane %v1854_v37, %v558_v31  ;;  %v633_v5 = vrot.slane %v1876_v4, %v558_v31 }
 0x183   : > { %v658_v9 = vrot.slane %v1854_v37, %v1836_v21 }
 0x184   : > { %v567_v25 = vadd.f32 %v563_v24, %v551_v22  ;;  %v569_v26 = vadd.f32 %v563_v24, %v553_v23  ;;  %v566_v35 = vadd.f32 %v559_v32, %v550_v33  ;;  %v568_v36 = vadd.f32 %v559_v32, %v552_v34 }
 0x186   : > { %v1842_v27 = vsel %vm572_vm0, %v567_v25, 0.0  ;;  %v1846_v28 = vsel %vm572_vm0, %v569_v26, 0.0  ;;  %v575_v43 = vsel %vm572_vm0, %v566_v35, 0.0  ;;  %v576_v48 = vsel %vm572_vm0, %v568_v36, 0.0 }
 0x187   : > { %v579_v29 = vmul.f32 1.442695, %v1842_v27  ;;  %v581_v30 = vmul.f32 1.442695, %v1846_v28  ;;  %v665_v26 = vstv %s1091_s11 }
 0x189   : > { %1279 = vpow2.f32 %v579_v29 }
 0x18a   : > { %1281 = vpow2.f32 %v581_v30 }
 0x196   : > { %v1280_v42 = vpop.eup %1279 }
 0x197   : > { %v1282_v44 = vpop.eup %1281  ;;  %v601_v45 = vmul.f32 %v1280_v42, %v1856_v38  ;;  %v796_v47 = vmul.f32 %v1280_v42, %v1858_v39  ;;  %v673_v42 = vrot.slane %v1876_v4, %v1836_v21 }
 0x198   : > { %v602_v49 = vmul.f32 %v1282_v44, %v1860_v40  ;;  %v797_v50 = vmul.f32 %v1282_v44, %v1862_v41 }
 0x199   : > { %v603_v51 = vadd.f32 %v601_v45, %v575_v43  ;;  %v798_v52 = vadd.f32 %v796_v47, %v575_v43  ;;  %v697_v43 = vsub.s32 2, %v1831_v18 }
 0x19a   : > { %v604_v53 = vadd.f32 %v602_v49, %v576_v48  ;;  %v799_v54 = vadd.f32 %v797_v50, %v576_v48 }
 0x19b   : > { %v619_v55 = vmul.f32 %v618_v46, %v603_v51  ;;  %v810_v56 = vmul.f32 %v798_v52, %v618_v46 }
 0x19c   : > { %v620_v57 = vmul.f32 %v618_v46, %v604_v53  ;;  %v811_v58 = vmul.f32 %v799_v54, %v618_v46  ;;  %v698_v46 = vrot.slane %v1854_v37, %v697_v43 }
 0x19d   : > { %621 = vadd.xlane.f32.xlu0 %v619_v55  ;;  %812 = vadd.xlane.f32.xlu1 %v810_v56 }
 0x1a1   : > { %623 = vadd.xlane.f32.xlu0 %v620_v57  ;;  %814 = vadd.xlane.f32.xlu1 %v811_v58 }
 0x226   : > { %v622_v60 = vpop.xlane.xlu0 %621  ;;  %v813_v61 = vpop.xlane.xlu1 %812 }
 0x227   : > { %v626_v62 = vadd.f32 %v625_v59, %v622_v60  ;;  %v816_v63 = vadd.f32 %v813_v61, %v625_v59  ;;  %v705_v60 = vstv %s1092_s14 }
 0x229   : > { %1283 = vtanh.f32 %v626_v62 }
 0x22a   : > { %1285 = vtanh.f32 %v816_v63  ;;  %v624_v0 = vpop.xlane.xlu0 %623  ;;  %v815_v1 = vpop.xlane.xlu1 %814 }
 0x22b   : > { %v627_v2 = vadd.f32 %v625_v59, %v624_v0  ;;  %v817_v3 = vadd.f32 %v815_v1, %v625_v59 }
 0x22d   : > { %1287 = vtanh.f32 %v627_v2 }
 0x22e   : > { %1289 = vtanh.f32 %v817_v3 }
 0x236   : > { %v1879_v6 = vpop.eup %1283 }
 0x237   : > { %v1881_v7 = vpop.eup %1285  ;;  %v634_v8 = vmul.f32 %v1879_v6, %v633_v5 }
 0x238   : > { %v820_v10 = vmul.f32 %v1881_v7, %v633_v5 }
 0x239   : > { %v636_v11 = vadd.f32 %v634_v8, %v603_v51  ;;  %v713_v8 = vrot.slane %v1876_v4, %v697_v43  ;;  %v642_v43 = vstv %s1094_s21 }
 0x23a   : > { %v1887_v12 = vpop.eup %1287  ;;  %v822_v13 = vadd.f32 %v820_v10, %v798_v52 }
 0x23b   : > { %v1889_v14 = vpop.eup %1289  ;;  %v659_v15 = vmul.f32 %v658_v9, %v636_v11  ;;  %v635_v16 = vmul.f32 %v1887_v12, %v633_v5 }
 0x23c   : > { %v821_v17 = vmul.f32 %v1889_v14, %v633_v5  ;;  %v840_v19 = vmul.f32 %v822_v13, %v658_v9 }
 0x23d   : > { %661 = vadd.xlane.f32.xlu0 %v659_v15  ;;  %v637_v22 = vadd.f32 %v635_v16, %v604_v53 }
 0x23e   : > { %v823_v23 = vadd.f32 %v821_v17, %v799_v54 }
 0x23f   : > { %v660_v24 = vmul.f32 %v658_v9, %v637_v22 }
 0x240   : > { %v841_v25 = vmul.f32 %v823_v23, %v658_v9  ;;  %v737_v9 = vsub.s32 3, %v1831_v18 }
 0x241   : > { %842 = vadd.xlane.f32.xlu0 %v840_v19  ;;  %663 = vadd.xlane.f32.xlu1 %v660_v24 }
 0x245   : > { %844 = vadd.xlane.f32.xlu1 %v841_v25 }
 0x2c6   : > { %v662_v29 = vpop.xlane.xlu0 %661 }
 0x2c7   : > { %v666_v30 = vadd.f32 %v665_v26, %v662_v29 }
 0x2c9   : > { %1291 = vtanh.f32 %v666_v30 }
 0x2ca   : > { %v664_v31 = vpop.xlane.xlu1 %663  ;;  %v843_v32 = vpop.xlane.xlu0 %842 }
 0x2cb   : > { %v667_v33 = vadd.f32 %v665_v26, %v664_v31  ;;  %v846_v34 = vadd.f32 %v843_v32, %v665_v26 }
 0x2cd   : > { %1293 = vtanh.f32 %v667_v33  ;;  %v605_v33 = vmul.f32 %v1856_v38, %v1856_v38  ;;  %v639_v38 = vmul.f32 %v1887_v12, %v1887_v12 }
 0x2ce   : > { %1295 = vtanh.f32 %v846_v34  ;;  %v845_v35 = vpop.xlane.xlu1 %844  ;;  %v606_v34 = vmul.f32 %v1860_v40, %v1860_v40 }
 0x2cf   : > { %v847_v36 = vadd.f32 %v845_v35, %v665_v26  ;;  %v800_v35 = vmul.f32 %v1858_v39, %v1858_v39  ;;  %v825_v39 = vmul.f32 %v1889_v14, %v1889_v14 }
 0x2d1   : > { %1297 = vtanh.f32 %v847_v36  ;;  %v801_v36 = vmul.f32 %v1862_v41, %v1862_v41 }
 0x2d6   : > { %v1896_v44 = vpop.eup %1291 }
 0x2d7   : > { %v674_v45 = vmul.f32 %v1896_v44, %v673_v42  ;;  %v678_v40 = vmul.f32 %v1896_v44, %v1896_v44 }
 0x2d9   : > { %v676_v47 = vadd.f32 %v674_v45, %v636_v11 }
 0x2da   : > { %v1900_v48 = vpop.eup %1293 }
 0x2db   : > { %v1902_v49 = vpop.eup %1295  ;;  %v699_v50 = vmul.f32 %v698_v46, %v676_v47  ;;  %v675_v51 = vmul.f32 %v1900_v48, %v673_v42 }
 0x2dc   : > { %v850_v52 = vmul.f32 %v1902_v49, %v673_v42  ;;  %v854_v45 = vmul.f32 %v1902_v49, %v1902_v49 }
 0x2dd   : > { %701 = vadd.xlane.f32.xlu0 %v699_v50  ;;  %v677_v21 = vadd.f32 %v675_v51, %v637_v22  ;;  %v680_v50 = vsub.f32 1.0, %v678_v40  ;;  %v682_v51 = vstv %s1095_s18 }
 0x2de   : > { %v1906_v53 = vpop.eup %1297  ;;  %v852_v54 = vadd.f32 %v850_v52, %v822_v13  ;;  %v738_v13 = vrot.slane %v1854_v37, %v737_v9 }
 0x2df   : > { %v700_v55 = vmul.f32 %v698_v46, %v677_v21  ;;  %v851_v56 = vmul.f32 %v1906_v53, %v673_v42  ;;  %v679_v42 = vmul.f32 %v1900_v48, %v1900_v48  ;;  %v855_v12 = vmul.f32 %v1906_v53, %v1906_v53 }
 0x2e0   : > { %v870_v57 = vmul.f32 %v852_v54, %v698_v46  ;;  %v856_v48 = vsub.f32 1.0, %v854_v45  ;;  %v683_v49 = vmul.f32 %v682_v51, %v680_v50 }
 0x2e1   : > { %703 = vadd.xlane.f32.xlu1 %v700_v55  ;;  %v853_v58 = vadd.f32 %v851_v56, %v823_v23  ;;  %v681_v44 = vsub.f32 1.0, %v679_v42  ;;  %v857_v56 = vsub.f32 1.0, %v855_v12 }
 0x2e2   : > { %872 = vadd.xlane.f32.xlu0 %v870_v57 }
 0x2e3   : > { %v871_v59 = vmul.f32 %v853_v58, %v698_v46  ;;  %v827_v46 = vsub.f32 1.0, %v825_v39 }
 0x2e5   : > { %874 = vadd.xlane.f32.xlu1 %v871_v59  ;;  %v829_v55 = vmul.f32 %v827_v46, %v642_v43 }
 0x366   : > { %v702_v61 = vpop.xlane.xlu0 %701 }
 0x367   : > { %v706_v62 = vadd.f32 %v705_v60, %v702_v61  ;;  %v684_v61 = vmul.f32 %v682_v51, %v681_v44 }
 0x369   : > { %1299 = vtanh.f32 %v706_v62 }
 0x36a   : > { %v704_v63 = vpop.xlane.xlu1 %703 }
 0x36b   : > { %v707_v0 = vadd.f32 %v705_v60, %v704_v63  ;;  %v873_v1 = vpop.xlane.xlu0 %872 }
 0x36c   : > { %v876_v2 = vadd.f32 %v873_v1, %v705_v60  ;;  %v831_v1 = vadd.f32 1.0, %v829_v55 }
 0x36d   : > { %1301 = vtanh.f32 %v707_v0  ;;  %v858_v0 = vmul.f32 %v856_v48, %v682_v51 }
 0x36e   : > { %1303 = vtanh.f32 %v876_v2  ;;  %v875_v3 = vpop.xlane.xlu1 %874  ;;  %v859_v2 = vmul.f32 %v857_v56, %v682_v51 }
 0x36f   : > { %v877_v5 = vadd.f32 %v875_v3, %v705_v60  ;;  %v722_v60 = vstv %s1096_s22 }
 0x371   : > { %1305 = vtanh.f32 %v877_v5 }
 0x376   : > { %v1300_v10 = vpop.eup %1299 }
 0x377   : > { %v714_v11 = vmul.f32 %v1300_v10, %v713_v8 }
 0x379   : > { %v1914_v15 = vadd.f32 %v714_v11, %v676_v47  ;;  %v718_v47 = vmul.f32 %v1300_v10, %v1300_v10  ;;  %v686_v11 = vadd.f32 1.0, %v684_v61 }
 0x37a   : > { %v1302_v16 = vpop.eup %1301 }
 0x37b   : > { %v1304_v17 = vpop.eup %1303  ;;  %v739_v19 = vmul.f32 %v738_v13, %v1914_v15  ;;  %v715_v22 = vmul.f32 %v1302_v16, %v713_v8  ;;  %v720_v57 = vsub.f32 1.0, %v718_v47 }
 0x37c   : > { %v880_v23 = vmul.f32 %v1304_v17, %v713_v8 }
 0x37d   : > { %741 = vadd.xlane.f32.xlu0 %v739_v19  ;;  %v1917_v24 = vadd.f32 %v715_v22, %v677_v21  ;;  %v719_v21 = vmul.f32 %v1302_v16, %v1302_v16  ;;  %v723_v10 = vmul.f32 %v722_v60, %v720_v57  ;;  %v860_v22 = vadd.f32 1.0, %v858_v0 }
 0x37e   : > { %v1919_v25 = vpop.eup %1305  ;;  %v1921_v26 = vadd.f32 %v880_v23, %v852_v54  ;;  %v833_v23 = vand.u32 2147483647, %v831_v1 }
 0x37f   : > { %v740_v29 = vmul.f32 %v738_v13, %v1917_v24  ;;  %v881_v30 = vmul.f32 %v1919_v25, %v713_v8  ;;  %v721_v53 = vsub.f32 1.0, %v719_v21  ;;  %v685_v8 = vadd.f32 1.0, %v683_v49 }
 0x380   : > { %v900_v37 = vmul.f32 %v1921_v26, %v738_v13  ;;  %v885_v16 = vmul.f32 %v1919_v25, %v1919_v25  ;;  %v1960_v49 = vrot.slane %v1876_v4, %v737_v9  ;;  %v762_v9 = vstv %s1097_s16 }
 0x381   : > { %743 = vadd.xlane.f32.xlu1 %v740_v29  ;;  %v1926_v31 = vadd.f32 %v881_v30, %v853_v58  ;;  %v884_v58 = vmul.f32 %v1304_v17, %v1304_v17  ;;  %v724_v19 = vmul.f32 %v722_v60, %v721_v53  ;;  %v861_v29 = vadd.f32 1.0, %v859_v2 }
 0x382   : > { %902 = vadd.xlane.f32.xlu0 %v900_v37  ;;  %v687_v30 = vand.u32 2147483647, %v685_v8  ;;  %v725_v37 = vadd.f32 1.0, %v723_v10 }
 0x383   : > { %v901_v32 = vmul.f32 %v1926_v31, %v738_v13  ;;  %v886_v3 = vsub.f32 1.0, %v884_v58 }
 0x384   : > { %v727_v25 = vand.u32 2147483647, %v725_v37 }
 0x385   : > { %904 = vadd.xlane.f32.xlu1 %v901_v32  ;;  %v888_v32 = vmul.f32 %v886_v3, %v722_v60 }
 0x386   : > { %583 = vadd.xlane.f32.xlu0 %v1842_v27  ;;  %v638_v27 = vmul.f32 %v1879_v6, %v1879_v6 }
 0x388   : > { %v640_v41 = vsub.f32 1.0, %v638_v27  ;;  %v863_v27 = vand.u32 2147483647, %v861_v29 }
 0x389   : > { %585 = vadd.xlane.f32.xlu1 %v1846_v28  ;;  %v824_v28 = vmul.f32 %v1881_v7, %v1881_v7  ;;  %v641_v7 = vsub.f32 1.0, %v639_v38  ;;  %v890_v38 = vadd.f32 1.0, %v888_v32 }
 0x38a   : > { %607 = vadd.xlane.f32.xlu0 %v605_v33  ;;  %v643_v14 = vmul.f32 %v642_v43, %v640_v41  ;;  %v688_v33 = vand.u32 2147483647, %v686_v11 }
 0x38b   : > { %v826_v6 = vsub.f32 1.0, %v824_v28  ;;  %v644_v54 = vmul.f32 %v642_v43, %v641_v7  ;;  %v745_v28 = vstv %s1093_s13 }
 0x38c   : > { %v645_v59 = vadd.f32 1.0, %v643_v14 }
 0x38d   : > { %609 = vadd.xlane.f32.xlu1 %v606_v34  ;;  %v828_v52 = vmul.f32 %v826_v6, %v642_v43  ;;  %v646_v63 = vadd.f32 1.0, %v644_v54  ;;  %v887_v34 = vsub.f32 1.0, %v885_v16  ;;  %v892_v43 = vand.u32 2147483647, %v890_v38 }
 0x38e   : > { %802 = vadd.xlane.f32.xlu0 %v800_v35  ;;  %v647_v5 = vand.u32 2147483647, %v645_v59  ;;  %v726_v35 = vadd.f32 1.0, %v724_v19 }
 0x38f   : > { %v830_v62 = vadd.f32 1.0, %v828_v52  ;;  %v648_v17 = vand.u32 2147483647, %v646_v63  ;;  %v889_v41 = vmul.f32 %v887_v34, %v722_v60 }
 0x390   : > { %1307 = vlog2.f32 %v647_v5  ;;  %v728_v40 = vand.u32 2147483647, %v726_v35 }
 0x391   : > { %804 = vadd.xlane.f32.xlu1 %v801_v36  ;;  %v832_v13 = vand.u32 2147483647, %v830_v62  ;;  %v862_v36 = vand.u32 2147483647, %v860_v22  ;;  %v891_v45 = vadd.f32 1.0, %v889_v41 }
 0x393   : > { %1309 = vlog2.f32 %v832_v13  ;;  %v893_v51 = vand.u32 2147483647, %v891_v45 }
 0x394   : > { %1311 = vlog2.f32 %v648_v17 }
 0x395   : > { %1313 = vlog2.f32 %v833_v23 }
 0x396   : > { %1315 = vlog2.f32 %v687_v30 }
 0x397   : > { %1317 = vlog2.f32 %v688_v33 }
 0x398   : > { %1319 = vlog2.f32 %v862_v36 }
 0x399   : > { %1321 = vlog2.f32 %v863_v27 }
 0x39a   : > { %1323 = vlog2.f32 %v727_v25 }
 0x39d   : > { %v1308_v47 = vpop.eup %1307 }
 0x39e   : > { %v650_v63 = vmul.f32 0.6931472, %v1308_v47 }
 0x3a0   : > { %v1310_v14 = vpop.eup %1309 }
 0x3a1   : > { %v1312_v44 = vpop.eup %1311  ;;  %v835_v0 = vmul.f32 0.6931472, %v1310_v14 }
 0x3a2   : > { %v1314_v54 = vpop.eup %1313  ;;  %v652_v5 = vmul.f32 0.6931472, %v1312_v44 }
 0x3a3   : > { %v1316_v48 = vpop.eup %1315  ;;  %v837_v10 = vmul.f32 0.6931472, %v1314_v54 }
 0x3a4   : > { %v1318_v55 = vpop.eup %1317  ;;  %v690_v2 = vmul.f32 0.6931472, %v1316_v48 }
 0x3a5   : > { %v1320_v58 = vpop.eup %1319  ;;  %v692_v16 = vmul.f32 0.6931472, %v1318_v55 }
 0x3a6   : > { %v1322_v60 = vpop.eup %1321  ;;  %v865_v22 = vmul.f32 0.6931472, %v1320_v58 }
 0x3a7   : > { %v1324_v62 = vpop.eup %1323  ;;  %v867_v32 = vmul.f32 0.6931472, %v1322_v60 }
 0x3a8   : > { %v730_v35 = vmul.f32 0.6931472, %v1324_v62 }
 0x406   : > { %v742_v39 = vpop.xlane.xlu0 %741 }
 0x407   : > { %v746_v42 = vadd.f32 %v745_v28, %v742_v39 }
 0x409   : > { %1325 = vtanh.f32 %v746_v42 }
 0x40a   : > { %v744_v6 = vpop.xlane.xlu1 %743  ;;  %1327 = vlog2.f32 %v728_v40 }
 0x40b   : > { %v747_v7 = vadd.f32 %v745_v28, %v744_v6  ;;  %v903_v12 = vpop.xlane.xlu0 %902  ;;  %1329 = vlog2.f32 %v892_v43 }
 0x40c   : > { %v906_v46 = vadd.f32 %v903_v12, %v745_v28 }
 0x40d   : > { %1331 = vtanh.f32 %v747_v7 }
 0x40e   : > { %1333 = vtanh.f32 %v906_v46  ;;  %v905_v50 = vpop.xlane.xlu1 %904 }
 0x40f   : > { %v907_v52 = vadd.f32 %v905_v50, %v745_v28  ;;  %v584_v21 = vpop.xlane.xlu0 %583 }
 0x410   : > { %v587_v56 = vsub.f32 -29.406033, %v584_v21 }
 0x411   : > { %1335 = vtanh.f32 %v907_v52 }
 0x412   : > { %v586_v57 = vpop.xlane.xlu1 %585  ;;  %1337 = vlog2.f32 %v893_v51 }
 0x413   : > { %v608_v59 = vpop.xlane.xlu0 %607  ;;  %v588_v53 = vsub.f32 -29.406033, %v586_v57 }
 0x414   : > { %v611_v61 = vmul.f32 0.5, %v608_v59 }
 0x416   : > { %v1326_v1 = vpop.eup %1325  ;;  %v613_v3 = vsub.f32 %v587_v56, %v611_v61  ;;  %v610_v8 = vpop.xlane.xlu1 %609 }
 0x417   : > { %v1328_v11 = vpop.eup %1327  ;;  %v758_v13 = vmul.f32 %v1326_v1, %v1326_v1  ;;  %v612_v17 = vmul.f32 0.5, %v610_v8  ;;  %v803_v18 = vpop.xlane.xlu0 %802  ;;  %v754_v4 = vmul.f32 %v1326_v1, %v1960_v49 }
 0x418   : > { %v653_v19 = vsub.f32 %v613_v3, %v650_v63  ;;  %v806_v23 = vmul.f32 0.5, %v803_v18  ;;  %v1330_v29 = vpop.eup %1329  ;;  %v1966_v27 = vmul.f32 0.6931472, %v1328_v11 }
 0x419   : > { %v760_v30 = vsub.f32 1.0, %v758_v13  ;;  %v614_v37 = vsub.f32 %v588_v53, %v612_v17  ;;  %v1964_v33 = vadd.f32 %v754_v4, %v1914_v15  ;;  %v895_v51 = vmul.f32 0.6931472, %v1330_v29 }
 0x41a   : > { %v1332_v34 = vpop.eup %1331  ;;  %v693_v36 = vsub.f32 %v653_v19, %v690_v2  ;;  %v808_v28 = vsub.f32 %v587_v56, %v806_v23  ;;  %v805_v25 = vpop.xlane.xlu1 %804 }
 0x41b   : > { %v1334_v38 = vpop.eup %1333  ;;  %v759_v39 = vmul.f32 %v1332_v34, %v1332_v34  ;;  %v763_v40 = vmul.f32 %v762_v9, %v760_v30  ;;  %v654_v41 = vsub.f32 %v614_v37, %v652_v5  ;;  %v807_v42 = vmul.f32 0.5, %v805_v25 }
 0x41c   : > { %v914_v43 = vmul.f32 %v1334_v38, %v1334_v38  ;;  %v733_v6 = vsub.f32 %v693_v36, %v730_v35  ;;  %v838_v45 = vsub.f32 %v808_v28, %v835_v0  ;;  %v775_v7 = vmul.f32 %v1964_v33, %v1964_v33 }
 0x41d   : > { %v761_v15 = vsub.f32 1.0, %v759_v39  ;;  %v765_v12 = vadd.f32 1.0, %v763_v40  ;;  %v694_v46 = vsub.f32 %v654_v41, %v692_v16  ;;  %v809_v47 = vsub.f32 %v588_v53, %v807_v42 }
 0x41e   : > { %v1336_v14 = vpop.eup %1335  ;;  %v916_v50 = vsub.f32 1.0, %v914_v43  ;;  %v868_v44 = vsub.f32 %v838_v45, %v865_v22  ;;  %777 = vadd.xlane.f32.xlu0 %v775_v7  ;;  %v755_v52 = vmul.f32 %v1332_v34, %v1960_v49  ;;  %v910_v53 = vmul.f32 %v1334_v38, %v1960_v49 }
 0x41f   : > { %v1338_v21 = vpop.eup %1337  ;;  %v915_v54 = vmul.f32 %v1336_v14, %v1336_v14  ;;  %v767_v48 = vand.u32 2147483647, %v765_v12  ;;  %v764_v55 = vmul.f32 %v762_v9, %v761_v15  ;;  %v734_v56 = vsub.f32 %v694_v46, %v1966_v27 }
 0x420   : > { %v918_v57 = vmul.f32 %v916_v50, %v762_v9  ;;  %v898_v58 = vsub.f32 %v868_v44, %v895_v51  ;;  %v839_v59 = vsub.f32 %v809_v47, %v837_v10  ;;  %v757_v60 = vadd.f32 %v755_v52, %v1917_v24 }
 0x421   : > { %v917_v61 = vsub.f32 1.0, %v915_v54  ;;  %1339 = vlog2.f32 %v767_v48  ;;  %v766_v62 = vadd.f32 1.0, %v764_v55  ;;  %v897_v0 = vmul.f32 0.6931472, %v1338_v21 }
 0x422   : > { %v920_v63 = vadd.f32 1.0, %v918_v57  ;;  %v869_v1 = vsub.f32 %v839_v59, %v867_v32  ;;  %v776_v2 = vmul.f32 %v757_v60, %v757_v60  ;;  %v912_v8 = vadd.f32 %v910_v53, %v1921_v26 }
 0x423   : > { %v768_v3 = vand.u32 2147483647, %v766_v62  ;;  %v919_v5 = vmul.f32 %v917_v61, %v762_v9  ;;  %v911_v11 = vmul.f32 %v1336_v14, %v1960_v49  ;;  %v785_v22 = vsel %vm572_vm0, %v1964_v33, 0.0 }
 0x424   : > { %v922_v13 = vand.u32 2147483647, %v920_v63  ;;  %v899_v16 = vsub.f32 %v869_v1, %v897_v0  ;;  %779 = vadd.xlane.f32.xlu1 %v776_v2  ;;  %v930_v10 = vmul.f32 %v912_v8, %v912_v8  ;;  %v786_v35 = vsel %vm572_vm0, %v757_v60, 0.0 }
 0x425   : > { %1341 = vlog2.f32 %v768_v3  ;;  %v921_v24 = vadd.f32 1.0, %v919_v5  ;;  %v913_v17 = vadd.f32 %v911_v11, %v1926_v31  ;;  %v940_v27 = vsel %vm572_vm0, %v912_v8, 0.0 }
 0x426   : > { %1343 = vlog2.f32 %v922_v13  ;;  %932 = vadd.xlane.f32.xlu0 %v930_v10 }
 0x427   : > { %v923_v18 = vand.u32 2147483647, %v921_v24  ;;  %v931_v4 = vmul.f32 %v913_v17, %v913_v17  ;;  %v941_v38 = vsel %vm572_vm0, %v913_v17, 0.0 }
 0x429   : > { %1345 = vlog2.f32 %v923_v18  ;;  %934 = vadd.xlane.f32.xlu1 %v931_v4 }
 0x42e   : > { %v1340_v19 = vpop.eup %1339 }
 0x42f   : > { %v770_v9 = vmul.f32 0.6931472, %v1340_v19 }
 0x431   : > { %v773_v26 = vsub.f32 %v733_v6, %v770_v9 }
 0x432   : > { %v1342_v49 = vpop.eup %1341 }
 0x433   : > { %v1344_v23 = vpop.eup %1343  ;;  %v772_v29 = vmul.f32 0.6931472, %v1342_v49  ;;  %v787_v31 = vsel %vm573_vm1, %v773_v26, %v785_v22 }
 0x434   : > { %v925_v30 = vmul.f32 0.6931472, %v1344_v23 }
 0x435   : > { %v774_v37 = vsub.f32 %v734_v56, %v772_v29 }
 0x436   : > { %v1346_v32 = vpop.eup %1345  ;;  %v928_v34 = vsub.f32 %v898_v58, %v925_v30 }
 0x437   : > { %v927_v36 = vmul.f32 0.6931472, %v1346_v32  ;;  %v788_v28 = vsel %vm573_vm1, %v774_v37, %v786_v35 }
 0x438   : > { %v942_v33 = vsel %vm573_vm1, %v928_v34, %v940_v27 }
 0x439   : > { %v929_v25 = vsub.f32 %v899_v16, %v927_v36 }
 0x43b   : > { %v943_v39 = vsel %vm573_vm1, %v929_v25, %v941_v38 }
 0x4a7   : > { %v778_v40 = vpop.xlane.xlu0 %777 }
 0x4a8   : > { %v781_v41 = vmul.f32 0.5, %v778_v40 }
 0x4aa   : > { %v783_v42 = vsub.f32 -29.406033, %v781_v41 }
 0x4ac   : > { %v789_v43 = vsel %vm574_vm2, %v783_v42, %v787_v31 }
 0x4ad   : > { %791 = vst [vmem:[#allocation13] sm:$0xff] %v789_v43  ;;  %v780_v6 = vpop.xlane.xlu1 %779 }
 0x4ae   : > { %v782_v45 = vmul.f32 0.5, %v780_v6 }
 0x4af   : > { %v933_v15 = vpop.xlane.xlu0 %932 }
 0x4b0   : > { %v784_v7 = vsub.f32 -29.406033, %v782_v45  ;;  %v936_v12 = vmul.f32 0.5, %v933_v15 }
 0x4b2   : > { %v790_v46 = vsel %vm574_vm2, %v784_v7, %v788_v28  ;;  %v938_v47 = vsub.f32 -29.406033, %v936_v12  ;;  %v935_v14 = vpop.xlane.xlu1 %934 }
 0x4b3   : > { %792 = vst [vmem:[#allocation13 + $0x8] sm:$0xff] %v790_v46  ;;  %v937_v50 = vmul.f32 0.5, %v935_v14 }
 0x4b4   : > { %v944_v51 = vsel %vm574_vm2, %v938_v47, %v942_v33 }
 0x4b5   : > { %947 = vst [vmem:[#allocation13 + $0x10] sm:$0xff] %v944_v51  ;;  %v939_v44 = vsub.f32 -29.406033, %v937_v50 }
 0x4b7   : > { %v945_v52 = vsel %vm574_vm2, %v939_v44, %v943_v39 }
 0x4b8   : > { %948 = vst [vmem:[#allocation13 + $0x18] sm:$0xff] %v945_v52 }
 0x4b9 PF: > { %s2059_s24 = sadd.s32 4294967295, %s1558_s29   ;;  %s1571_s30 = smov [#allocation13]  }
 0x4ba   : > { %p2006_p5 = scmp.eq.s32.totalorder %s2059_s24, 3  ;;  %s958_s9 = sshll.u32 %s1571_s30, 4  ;;  %s959_s9 = int_to_ptr.vmem [resolvable:$true] %s958_s9 }
 0x4bb   : > { %s1468_s8 = scalar_lea.vmem %s959_s9, 512  ;;  %p1475_p2 = scmp.lt.s32.totalorder %s959_s9, %s959_s9 }
 0x4bc   : > { %p1469_p12 = scmp.ne.s32.totalorder %s959_s9, %s1468_s8  ;;  %p1476_p6 = scmp.lt.s32.totalorder %s1468_s8, %s1468_s8 }
 0x4be   : > { %p1470_p13 = pnand %p1469_p12, %p2006_p5  ;;  %p1477_p3 = por %p1476_p6, %p1475_p2 }
 0x4c0   : > { %p1471_p7 = pneg %p1470_p13 }
 0x4c2   : > { %p1478_p9 = pnand %p1477_p3, %p1471_p7 }
 0x4c4   : > { %1481 = shalt.err (!%p1478_p9)
}
 0x4c5   : > { %s1572_s10 = smov 128   ;;  %s1573_s0 = smov 8  }
 0x4c6   : > { %1187 = dma.vmem_to_hbm [thread:$0]  (%p2006_p5), %s959_s9, 512, %s2046_s7, [#allocation5], %s1572_s10, %s1572_s10, %s1573_s0  }
 0x4c7   : > { %1533 = dma.done.wait (%p2006_p5), [#allocation5], 512  }
 0x4c8   : > { %1535 = vsyncadd (%p2006_p5), [#allocation5], 4294966784 }
 0x4c9 PF: > { %s24_s29 = sadd.s32 1, %s1558_s29   ;;  %s2061_s24 = smov %s1542_s25 }
 0x4ca   : > { %p21_p8 = scmp.ge.s32.totalorder %s24_s29, 6   ;;  %s2062_s25 = smov %s1546_s26 }
 0x4cb   : > { %s2063_s26 = smov %s1720_s15  ;;  %s2064_s27 = smov %s1554_s28 }
 0x4cc   : > { %s2065_s28 = smov %s2067_s17  ;;  %23 = sbr.rel (!%p21_p8) target bundleno = 10 (0xa), region = 115 }
 0x4d1   :  { %974 = vsyncpa [#allocation4], 1 }
 0x4d2   :  { %976 = vsyncpa [#allocation4 + $0x1], 1 }
 0x4d3   :  { %977 = vsyncpa [#allocation8], 1 }
 0x4d4   :  { %978 = vsyncpa [#allocation11], 1 }
 0x4d5   :  { %979 = vsyncpa [#allocation5], 1 }
 0x4d6   :  { %981 = vsyncpa [#allocation5 + $0x1], 1 }
 0x4d7   :  { %982 = vsyncpa [#allocation6], 1 }
 0x4d8   :  { %984 = vsyncpa [#allocation6 + $0x1], 1 }

</bundles_post_ra>
